<compile_context>
chip_gen: v7x
topology: tpu7x:2x2x1
jax: 0.10.0
libtpu: 0.0.40
codegen_flags: <defaults>
</compile_context>

<pallas_src>
import jax
import jax.numpy as jnp
from jax.experimental import pallas as pl
from jax.experimental.pallas import tpu as pltpu

SIGMA_DATA = 0.5  # sigma_data default in EDMPrecondLEGO.__init__


def edm_precond_kernel(sigma_ref,                       # scalar-prefetch (SMEM), (B,)
                       x_ref, w1_ref, w2_ref, pp_ref,   # VMEM blocks
                       o_ref):
    B, C, HW = x_ref.shape
    HID = w1_ref.shape[0]
    sd2 = SIGMA_DATA * SIGMA_DATA

    # Packed small parameters, loaded once (lane-aligned (HID, 4) block).
    b1 = pp_ref[:, 0:1]          # (HID, 1)
    wt = pp_ref[:, 1:2]          # (HID, 1)
    bt = pp_ref[:, 2:3]          # (HID, 1)
    b2 = pp_ref[0:C, 3:4]        # (C, 1)
    w1 = w1_ref[...]             # (HID, C)
    w2 = w2_ref[...]             # (C, HID)

    # Per-batch scalar EDM coefficients (SMEM scalar math, unrolled over small B).
    c_skip, c_out, c_in, c_noise = [], [], [], []
    for b in range(B):
        sigma = sigma_ref[b]                            # per-batch scalar (SMEM)
        var = sigma * sigma + sd2
        rstd = jax.lax.rsqrt(var)
        c_skip.append(sd2 / var)
        c_in.append(rstd)
        c_out.append(sigma * SIGMA_DATA * rstd)         # sigma*sd / sqrt(var)
        c_noise.append(jnp.log(sigma) * 0.25)           # (sigma > 0 assumed)

    # Fold batch into the lane dimension: every vector op below covers the
    # whole (.., B*HW) slab at once (HW multiple of 128 -> aligned concat).
    x_f32 = [x_ref[b].astype(jnp.float32) for b in range(B)]            # B x (C, HW)
    x_in = jnp.concatenate([c_in[b] * x_f32[b] for b in range(B)],
                           axis=-1)                                     # (C, B*HW)

    # Timestep embedding per batch, lane-broadcast once and concatenated.
    emb = jnp.concatenate(
        [jnp.broadcast_to(jax.nn.silu(c_noise[b] * wt + bt), (HID, HW))
         for b in range(B)], axis=-1)                                   # (HID, B*HW)

    # --- synthetic "lego" model F(x_in, c_noise) ---
    # First contraction (K = C = 4): VPU broadcast-FMAs, MXU not worth it.
    h = w1[:, 0:1] * x_in[0:1, :]                                       # (HID, B*HW)
    for c in range(1, C):
        h = h + w1[:, c:c + 1] * x_in[c:c + 1, :]
    h = jax.nn.silu(h + b1 + emb)                                       # (HID, B*HW)

    # Second contraction (M = C = 4, K = HID = 32): VPU broadcast-FMAs.
    f = b2 + w2[:, 0:1] * h[0:1, :]                                     # (C, B*HW)
    for k in range(1, HID):
        f = f + w2[:, k:k + 1] * h[k:k + 1, :]

    # --- EDM output combination, per-batch stores (static 128-aligned slices) ---
    for b in range(B):
        o_ref[b] = c_skip[b] * x_f32[b] + c_out[b] * f[:, b * HW:(b + 1) * HW]


def edm_precond_lego(x, sigma, w1, w2, packed_bias):
    """x: (B, C, H, W) any float dtype; sigma: scalar or (B,), must be > 0."""
    B, C, H, W = x.shape
    HW = H * W
    x_flat = x.reshape(B, C, HW)                        # native dtype; cast in kernel
    sigma = jnp.broadcast_to(
        jnp.asarray(sigma, jnp.float32).reshape(-1), (B,)).astype(jnp.float32)
    HID = w1.shape[0]

    grid_spec = pltpu.PrefetchScalarGridSpec(
        num_scalar_prefetch=1,                          # sigma -> SMEM
        grid=(1,),                                      # single step: whole batch
        in_specs=[
            pl.BlockSpec((B, C, HW), lambda i, s: (0, 0, 0)),   # x
            pl.BlockSpec((HID, C), lambda i, s: (0, 0)),        # w1
            pl.BlockSpec((C, HID), lambda i, s: (0, 0)),        # w2
            pl.BlockSpec((HID, 4), lambda i, s: (0, 0)),        # packed b1|wt|bt|b2
        ],
        out_specs=pl.BlockSpec((B, C, HW), lambda i, s: (0, 0, 0)),
    )

    out = pl.pallas_call(
        edm_precond_kernel,
        out_shape=jax.ShapeDtypeStruct((B, C, HW), jnp.float32),
        grid_spec=grid_spec,
        compiler_params=pltpu.CompilerParams(
            dimension_semantics=("arbitrary",)),
    )(sigma, x_flat, w1, w2, packed_bias)

    return out.reshape(B, C, H, W)


def init_params(key, channels, hidden):
    k1, k2, k3, k4 = jax.random.split(key, 4)
    w1 = jax.random.normal(k1, (hidden, channels), jnp.float32) * 0.1
    b1 = jnp.zeros((hidden, 1), jnp.float32)
    wt = jax.random.normal(k2, (hidden, 1), jnp.float32) * 0.1
    bt = jax.random.normal(k3, (hidden, 1), jnp.float32) * 0.1
    w2 = jax.random.normal(k4, (channels, hidden), jnp.float32) * 0.1
    b2 = jnp.zeros((channels, 1), jnp.float32)
    return (w1, b1, wt, bt, w2, b2)


def pack_small_params(b1, wt, bt, b2, hidden, channels):
    """Pack (HID,1) biases + (C,1) output bias into one (HID, 4) VMEM block."""
    pp = jnp.zeros((hidden, 4), jnp.float32)
    pp = pp.at[:, 0].set(b1[:, 0])
    pp = pp.at[:, 1].set(wt[:, 0])
    pp = pp.at[:, 2].set(bt[:, 0])
    pp = pp.at[:channels, 3].set(b2[:, 0])
    return pp


def reference(x, sigma, params):
    """Pure-JAX reference mirroring the PyTorch forward semantics."""
    B, C, H, W = x.shape
    x = x.astype(jnp.float32)
    sigma = jnp.broadcast_to(
        jnp.asarray(sigma, jnp.float32).reshape(-1), (B,)).reshape(B, 1, 1, 1)
    w1, b1, wt, bt, w2, b2 = params
    c_skip = SIGMA_DATA ** 2 / (sigma ** 2 + SIGMA_DATA ** 2)
    c_out = sigma * SIGMA_DATA / jnp.sqrt(sigma ** 2 + SIGMA_DATA ** 2)
    c_in = 1.0 / jnp.sqrt(SIGMA_DATA ** 2 + sigma ** 2)
    c_noise = jnp.log(sigma) / 4.0

    hi = jax.lax.Precision.HIGHEST
    x_in = (c_in * x).reshape(B, C, H * W)
    emb = jax.nn.silu(c_noise.reshape(B, 1, 1) * wt[None] + bt[None])  # (B,HID,1)
    h = jax.nn.silu(jnp.einsum('hc,bcn->bhn', w1, x_in, precision=hi)
                    + b1[None] + emb)
    f = jnp.einsum('ch,bhn->bcn', w2, h, precision=hi) + b2[None]
    f = f.reshape(B, C, H, W)
    return c_skip * x + c_out * f


if __name__ == "__main__":
    key = jax.random.PRNGKey(0)
    kx, ks, kp = jax.random.split(key, 3)

    B, C, H, W = 2, 4, 16, 16
    HID = 32

    x = jax.random.normal(kx, (B, C, H, W), jnp.float32)
    sigma = jnp.exp(jax.random.normal(ks, (B,), jnp.float32))   # positive sigmas
    params = init_params(kp, C, HID)
    w1, b1, wt, bt, w2, b2 = params
    pp = pack_small_params(b1, wt, bt, b2, HID, C)

    out = edm_precond_lego(x, sigma, w1, w2, pp)
    out = jax.block_until_ready(out)

    ref = reference(x, sigma, params)
    assert out.shape == (B, C, H, W)
    assert out.dtype == jnp.float32
    assert jnp.allclose(out, ref, atol=1e-5, rtol=1e-5), "mismatch vs reference"

    print("KERNEL_OK")
</pallas_src>

<mosaic_0001>
module attributes {stable_mosaic.version = 11 : i64} {
  func.func @edm_precond_kernel(%arg0: i32, %arg1: memref<2xf32, #tpu.memory_space<smem>>, %arg2: memref<2x4x256xf32, #tpu.memory_space<vmem>>, %arg3: memref<32x4xf32, #tpu.memory_space<vmem>>, %arg4: memref<4x32xf32, #tpu.memory_space<vmem>>, %arg5: memref<32x4xf32, #tpu.memory_space<vmem>>, %arg6: memref<2x4x256xf32, #tpu.memory_space<vmem>>) attributes {dimension_semantics = [#tpu.dimension_semantics<arbitrary>], iteration_bounds = array<i64: 1>, scalar_prefetch = 1 : i64, scratch_operands = 0 : i64, tpu.core_type = #tpu.core_type<tc>, window_params = [{pipeline_mode = #tpu.pipeline_mode<synchronous>, transform_indices = @transform_0, window_bounds = array<i64: 2, 4, 256>}, {pipeline_mode = #tpu.pipeline_mode<synchronous>, transform_indices = @transform_1, window_bounds = array<i64: 32, 4>}, {pipeline_mode = #tpu.pipeline_mode<synchronous>, transform_indices = @transform_2, window_bounds = array<i64: 4, 32>}, {pipeline_mode = #tpu.pipeline_mode<synchronous>, transform_indices = @transform_3, window_bounds = array<i64: 32, 4>}, {pipeline_mode = #tpu.pipeline_mode<synchronous>, transform_indices = @transform_4, window_bounds = array<i64: 2, 4, 256>}]} {
    %c0 = arith.constant 0 : index
    %c0_0 = arith.constant 0 : index
    %0 = vector.load %arg5[%c0, %c0_0] : memref<32x4xf32, #tpu.memory_space<vmem>>, vector<32x1xf32>
    %c0_1 = arith.constant 0 : index
    %c1 = arith.constant 1 : index
    %1 = vector.load %arg5[%c0_1, %c1] : memref<32x4xf32, #tpu.memory_space<vmem>>, vector<32x1xf32>
    %c0_2 = arith.constant 0 : index
    %c2 = arith.constant 2 : index
    %2 = vector.load %arg5[%c0_2, %c2] : memref<32x4xf32, #tpu.memory_space<vmem>>, vector<32x1xf32>
    %c0_3 = arith.constant 0 : index
    %c3 = arith.constant 3 : index
    %3 = vector.load %arg5[%c0_3, %c3] : memref<32x4xf32, #tpu.memory_space<vmem>>, vector<4x1xf32>
    %c0_4 = arith.constant 0 : index
    %c0_5 = arith.constant 0 : index
    %4 = vector.load %arg3[%c0_4, %c0_5] : memref<32x4xf32, #tpu.memory_space<vmem>>, vector<32x4xf32>
    %c0_6 = arith.constant 0 : index
    %c0_7 = arith.constant 0 : index
    %5 = vector.load %arg4[%c0_6, %c0_7] : memref<4x32xf32, #tpu.memory_space<vmem>>, vector<4x32xf32>
    %c0_8 = arith.constant 0 : index
    %6 = memref.load %arg1[%c0_8] : memref<2xf32, #tpu.memory_space<smem>>
    %7 = arith.mulf %6, %6 : f32
    %cst = arith.constant 2.500000e-01 : f32
    %8 = arith.addf %7, %cst : f32
    %9 = math.rsqrt %8 : f32
    %cst_9 = arith.constant 2.500000e-01 : f32
    %10 = arith.divf %cst_9, %8 : f32
    %cst_10 = arith.constant 5.000000e-01 : f32
    %11 = arith.mulf %6, %cst_10 : f32
    %12 = arith.mulf %11, %9 : f32
    %13 = math.log %6 : f32
    %cst_11 = arith.constant 2.500000e-01 : f32
    %14 = arith.mulf %13, %cst_11 : f32
    %c1_12 = arith.constant 1 : index
    %15 = memref.load %arg1[%c1_12] : memref<2xf32, #tpu.memory_space<smem>>
    %16 = arith.mulf %15, %15 : f32
    %cst_13 = arith.constant 2.500000e-01 : f32
    %17 = arith.addf %16, %cst_13 : f32
    %18 = math.rsqrt %17 : f32
    %cst_14 = arith.constant 2.500000e-01 : f32
    %19 = arith.divf %cst_14, %17 : f32
    %cst_15 = arith.constant 5.000000e-01 : f32
    %20 = arith.mulf %15, %cst_15 : f32
    %21 = arith.mulf %20, %18 : f32
    %22 = math.log %15 : f32
    %cst_16 = arith.constant 2.500000e-01 : f32
    %23 = arith.mulf %22, %cst_16 : f32
    %c0_17 = arith.constant 0 : index
    %c0_18 = arith.constant 0 : index
    %c0_19 = arith.constant 0 : index
    %24 = vector.load %arg2[%c0_17, %c0_18, %c0_19] : memref<2x4x256xf32, #tpu.memory_space<vmem>>, vector<1x4x256xf32>
    %25 = vector.shape_cast %24 : vector<1x4x256xf32> to vector<4x256xf32>
    %c1_20 = arith.constant 1 : index
    %c0_21 = arith.constant 0 : index
    %c0_22 = arith.constant 0 : index
    %26 = vector.load %arg2[%c1_20, %c0_21, %c0_22] : memref<2x4x256xf32, #tpu.memory_space<vmem>>, vector<1x4x256xf32>
    %27 = vector.shape_cast %26 : vector<1x4x256xf32> to vector<4x256xf32>
    %28 = vector.broadcast %9 : f32 to vector<4x256xf32>
    %29 = arith.mulf %28, %25 : vector<4x256xf32>
    %30 = vector.broadcast %18 : f32 to vector<4x256xf32>
    %31 = arith.mulf %30, %27 : vector<4x256xf32>
    %32 = tpu.concatenate %29, %31 in 1 : vector<4x256xf32>, vector<4x256xf32> -> vector<4x512xf32>
    %33 = vector.broadcast %14 : f32 to vector<32x1xf32>
    %34 = arith.mulf %33, %1 : vector<32x1xf32>
    %35 = arith.addf %34, %2 : vector<32x1xf32>
    %36 = arith.negf %35 : vector<32x1xf32>
    %37 = math.exp %36 : vector<32x1xf32>
    %cst_23 = arith.constant 1.000000e+00 : f32
    %38 = vector.broadcast %cst_23 : f32 to vector<32x1xf32>
    %39 = arith.addf %38, %37 : vector<32x1xf32>
    %40 = arith.divf %38, %39 : vector<32x1xf32>
    %41 = arith.mulf %35, %40 : vector<32x1xf32>
    %42 = vector.shape_cast %41 : vector<32x1xf32> to vector<32x1xf32>
    %43 = vector.broadcast %42 : vector<32x1xf32> to vector<32x256xf32>
    %44 = vector.broadcast %23 : f32 to vector<32x1xf32>
    %45 = arith.mulf %44, %1 : vector<32x1xf32>
    %46 = arith.addf %45, %2 : vector<32x1xf32>
    %47 = arith.negf %46 : vector<32x1xf32>
    %48 = math.exp %47 : vector<32x1xf32>
    %cst_24 = arith.constant 1.000000e+00 : f32
    %49 = vector.broadcast %cst_24 : f32 to vector<32x1xf32>
    %50 = arith.addf %49, %48 : vector<32x1xf32>
    %51 = arith.divf %49, %50 : vector<32x1xf32>
    %52 = arith.mulf %46, %51 : vector<32x1xf32>
    %53 = vector.shape_cast %52 : vector<32x1xf32> to vector<32x1xf32>
    %54 = vector.broadcast %53 : vector<32x1xf32> to vector<32x256xf32>
    %55 = tpu.concatenate %43, %54 in 1 : vector<32x256xf32>, vector<32x256xf32> -> vector<32x512xf32>
    %56 = vector.extract_strided_slice %4 {offsets = [0, 0], sizes = [32, 1], strides = [1, 1]} : vector<32x4xf32> to vector<32x1xf32>
    %57 = vector.extract_strided_slice %32 {offsets = [0, 0], sizes = [1, 512], strides = [1, 1]} : vector<4x512xf32> to vector<1x512xf32>
    %58 = vector.broadcast %56 : vector<32x1xf32> to vector<32x512xf32>
    %59 = vector.broadcast %57 : vector<1x512xf32> to vector<32x512xf32>
    %60 = arith.mulf %58, %59 : vector<32x512xf32>
    %61 = vector.extract_strided_slice %4 {offsets = [0, 1], sizes = [32, 1], strides = [1, 1]} : vector<32x4xf32> to vector<32x1xf32>
    %62 = vector.extract_strided_slice %32 {offsets = [1, 0], sizes = [1, 512], strides = [1, 1]} : vector<4x512xf32> to vector<1x512xf32>
    %63 = vector.broadcast %61 : vector<32x1xf32> to vector<32x512xf32>
    %64 = vector.broadcast %62 : vector<1x512xf32> to vector<32x512xf32>
    %65 = arith.mulf %63, %64 : vector<32x512xf32>
    %66 = arith.addf %60, %65 : vector<32x512xf32>
    %67 = vector.extract_strided_slice %4 {offsets = [0, 2], sizes = [32, 1], strides = [1, 1]} : vector<32x4xf32> to vector<32x1xf32>
    %68 = vector.extract_strided_slice %32 {offsets = [2, 0], sizes = [1, 512], strides = [1, 1]} : vector<4x512xf32> to vector<1x512xf32>
    %69 = vector.broadcast %67 : vector<32x1xf32> to vector<32x512xf32>
    %70 = vector.broadcast %68 : vector<1x512xf32> to vector<32x512xf32>
    %71 = arith.mulf %69, %70 : vector<32x512xf32>
    %72 = arith.addf %66, %71 : vector<32x512xf32>
    %73 = vector.extract_strided_slice %4 {offsets = [0, 3], sizes = [32, 1], strides = [1, 1]} : vector<32x4xf32> to vector<32x1xf32>
    %74 = vector.extract_strided_slice %32 {offsets = [3, 0], sizes = [1, 512], strides = [1, 1]} : vector<4x512xf32> to vector<1x512xf32>
    %75 = vector.broadcast %73 : vector<32x1xf32> to vector<32x512xf32>
    %76 = vector.broadcast %74 : vector<1x512xf32> to vector<32x512xf32>
    %77 = arith.mulf %75, %76 : vector<32x512xf32>
    %78 = arith.addf %72, %77 : vector<32x512xf32>
    %79 = vector.broadcast %0 : vector<32x1xf32> to vector<32x512xf32>
    %80 = arith.addf %78, %79 : vector<32x512xf32>
    %81 = arith.addf %80, %55 : vector<32x512xf32>
    %82 = arith.negf %81 : vector<32x512xf32>
    %83 = math.exp %82 : vector<32x512xf32>
    %cst_25 = arith.constant 1.000000e+00 : f32
    %84 = vector.broadcast %cst_25 : f32 to vector<32x512xf32>
    %85 = arith.addf %84, %83 : vector<32x512xf32>
    %86 = arith.divf %84, %85 : vector<32x512xf32>
    %87 = arith.mulf %81, %86 : vector<32x512xf32>
    %88 = vector.extract_strided_slice %5 {offsets = [0, 0], sizes = [4, 1], strides = [1, 1]} : vector<4x32xf32> to vector<4x1xf32>
    %89 = vector.extract_strided_slice %87 {offsets = [0, 0], sizes = [1, 512], strides = [1, 1]} : vector<32x512xf32> to vector<1x512xf32>
    %90 = vector.broadcast %88 : vector<4x1xf32> to vector<4x512xf32>
    %91 = vector.broadcast %89 : vector<1x512xf32> to vector<4x512xf32>
    %92 = arith.mulf %90, %91 : vector<4x512xf32>
    %93 = vector.broadcast %3 : vector<4x1xf32> to vector<4x512xf32>
    %94 = arith.addf %93, %92 : vector<4x512xf32>
    %95 = vector.extract_strided_slice %5 {offsets = [0, 1], sizes = [4, 1], strides = [1, 1]} : vector<4x32xf32> to vector<4x1xf32>
    %96 = vector.extract_strided_slice %87 {offsets = [1, 0], sizes = [1, 512], strides = [1, 1]} : vector<32x512xf32> to vector<1x512xf32>
    %97 = vector.broadcast %95 : vector<4x1xf32> to vector<4x512xf32>
    %98 = vector.broadcast %96 : vector<1x512xf32> to vector<4x512xf32>
    %99 = arith.mulf %97, %98 : vector<4x512xf32>
    %100 = arith.addf %94, %99 : vector<4x512xf32>
    %101 = vector.extract_strided_slice %5 {offsets = [0, 2], sizes = [4, 1], strides = [1, 1]} : vector<4x32xf32> to vector<4x1xf32>
    %102 = vector.extract_strided_slice %87 {offsets = [2, 0], sizes = [1, 512], strides = [1, 1]} : vector<32x512xf32> to vector<1x512xf32>
    %103 = vector.broadcast %101 : vector<4x1xf32> to vector<4x512xf32>
    %104 = vector.broadcast %102 : vector<1x512xf32> to vector<4x512xf32>
    %105 = arith.mulf %103, %104 : vector<4x512xf32>
    %106 = arith.addf %100, %105 : vector<4x512xf32>
    %107 = vector.extract_strided_slice %5 {offsets = [0, 3], sizes = [4, 1], strides = [1, 1]} : vector<4x32xf32> to vector<4x1xf32>
    %108 = vector.extract_strided_slice %87 {offsets = [3, 0], sizes = [1, 512], strides = [1, 1]} : vector<32x512xf32> to vector<1x512xf32>
    %109 = vector.broadcast %107 : vector<4x1xf32> to vector<4x512xf32>
    %110 = vector.broadcast %108 : vector<1x512xf32> to vector<4x512xf32>
    %111 = arith.mulf %109, %110 : vector<4x512xf32>
    %112 = arith.addf %106, %111 : vector<4x512xf32>
    %113 = vector.extract_strided_slice %5 {offsets = [0, 4], sizes = [4, 1], strides = [1, 1]} : vector<4x32xf32> to vector<4x1xf32>
    %114 = vector.extract_strided_slice %87 {offsets = [4, 0], sizes = [1, 512], strides = [1, 1]} : vector<32x512xf32> to vector<1x512xf32>
    %115 = vector.broadcast %113 : vector<4x1xf32> to vector<4x512xf32>
    %116 = vector.broadcast %114 : vector<1x512xf32> to vector<4x512xf32>
    %117 = arith.mulf %115, %116 : vector<4x512xf32>
    %118 = arith.addf %112, %117 : vector<4x512xf32>
    %119 = vector.extract_strided_slice %5 {offsets = [0, 5], sizes = [4, 1], strides = [1, 1]} : vector<4x32xf32> to vector<4x1xf32>
    %120 = vector.extract_strided_slice %87 {offsets = [5, 0], sizes = [1, 512], strides = [1, 1]} : vector<32x512xf32> to vector<1x512xf32>
    %121 = vector.broadcast %119 : vector<4x1xf32> to vector<4x512xf32>
    %122 = vector.broadcast %120 : vector<1x512xf32> to vector<4x512xf32>
    %123 = arith.mulf %121, %122 : vector<4x512xf32>
    %124 = arith.addf %118, %123 : vector<4x512xf32>
    %125 = vector.extract_strided_slice %5 {offsets = [0, 6], sizes = [4, 1], strides = [1, 1]} : vector<4x32xf32> to vector<4x1xf32>
    %126 = vector.extract_strided_slice %87 {offsets = [6, 0], sizes = [1, 512], strides = [1, 1]} : vector<32x512xf32> to vector<1x512xf32>
    %127 = vector.broadcast %125 : vector<4x1xf32> to vector<4x512xf32>
    %128 = vector.broadcast %126 : vector<1x512xf32> to vector<4x512xf32>
    %129 = arith.mulf %127, %128 : vector<4x512xf32>
    %130 = arith.addf %124, %129 : vector<4x512xf32>
    %131 = vector.extract_strided_slice %5 {offsets = [0, 7], sizes = [4, 1], strides = [1, 1]} : vector<4x32xf32> to vector<4x1xf32>
    %132 = vector.extract_strided_slice %87 {offsets = [7, 0], sizes = [1, 512], strides = [1, 1]} : vector<32x512xf32> to vector<1x512xf32>
    %133 = vector.broadcast %131 : vector<4x1xf32> to vector<4x512xf32>
    %134 = vector.broadcast %132 : vector<1x512xf32> to vector<4x512xf32>
    %135 = arith.mulf %133, %134 : vector<4x512xf32>
    %136 = arith.addf %130, %135 : vector<4x512xf32>
    %137 = vector.extract_strided_slice %5 {offsets = [0, 8], sizes = [4, 1], strides = [1, 1]} : vector<4x32xf32> to vector<4x1xf32>
    %138 = vector.extract_strided_slice %87 {offsets = [8, 0], sizes = [1, 512], strides = [1, 1]} : vector<32x512xf32> to vector<1x512xf32>
    %139 = vector.broadcast %137 : vector<4x1xf32> to vector<4x512xf32>
    %140 = vector.broadcast %138 : vector<1x512xf32> to vector<4x512xf32>
    %141 = arith.mulf %139, %140 : vector<4x512xf32>
    %142 = arith.addf %136, %141 : vector<4x512xf32>
    %143 = vector.extract_strided_slice %5 {offsets = [0, 9], sizes = [4, 1], strides = [1, 1]} : vector<4x32xf32> to vector<4x1xf32>
    %144 = vector.extract_strided_slice %87 {offsets = [9, 0], sizes = [1, 512], strides = [1, 1]} : vector<32x512xf32> to vector<1x512xf32>
    %145 = vector.broadcast %143 : vector<4x1xf32> to vector<4x512xf32>
    %146 = vector.broadcast %144 : vector<1x512xf32> to vector<4x512xf32>
    %147 = arith.mulf %145, %146 : vector<4x512xf32>
    %148 = arith.addf %142, %147 : vector<4x512xf32>
    %149 = vector.extract_strided_slice %5 {offsets = [0, 10], sizes = [4, 1], strides = [1, 1]} : vector<4x32xf32> to vector<4x1xf32>
    %150 = vector.extract_strided_slice %87 {offsets = [10, 0], sizes = [1, 512], strides = [1, 1]} : vector<32x512xf32> to vector<1x512xf32>
    %151 = vector.broadcast %149 : vector<4x1xf32> to vector<4x512xf32>
    %152 = vector.broadcast %150 : vector<1x512xf32> to vector<4x512xf32>
    %153 = arith.mulf %151, %152 : vector<4x512xf32>
    %154 = arith.addf %148, %153 : vector<4x512xf32>
    %155 = vector.extract_strided_slice %5 {offsets = [0, 11], sizes = [4, 1], strides = [1, 1]} : vector<4x32xf32> to vector<4x1xf32>
    %156 = vector.extract_strided_slice %87 {offsets = [11, 0], sizes = [1, 512], strides = [1, 1]} : vector<32x512xf32> to vector<1x512xf32>
    %157 = vector.broadcast %155 : vector<4x1xf32> to vector<4x512xf32>
    %158 = vector.broadcast %156 : vector<1x512xf32> to vector<4x512xf32>
    %159 = arith.mulf %157, %158 : vector<4x512xf32>
    %160 = arith.addf %154, %159 : vector<4x512xf32>
    %161 = vector.extract_strided_slice %5 {offsets = [0, 12], sizes = [4, 1], strides = [1, 1]} : vector<4x32xf32> to vector<4x1xf32>
    %162 = vector.extract_strided_slice %87 {offsets = [12, 0], sizes = [1, 512], strides = [1, 1]} : vector<32x512xf32> to vector<1x512xf32>
    %163 = vector.broadcast %161 : vector<4x1xf32> to vector<4x512xf32>
    %164 = vector.broadcast %162 : vector<1x512xf32> to vector<4x512xf32>
    %165 = arith.mulf %163, %164 : vector<4x512xf32>
    %166 = arith.addf %160, %165 : vector<4x512xf32>
    %167 = vector.extract_strided_slice %5 {offsets = [0, 13], sizes = [4, 1], strides = [1, 1]} : vector<4x32xf32> to vector<4x1xf32>
    %168 = vector.extract_strided_slice %87 {offsets = [13, 0], sizes = [1, 512], strides = [1, 1]} : vector<32x512xf32> to vector<1x512xf32>
    %169 = vector.broadcast %167 : vector<4x1xf32> to vector<4x512xf32>
    %170 = vector.broadcast %168 : vector<1x512xf32> to vector<4x512xf32>
    %171 = arith.mulf %169, %170 : vector<4x512xf32>
    %172 = arith.addf %166, %171 : vector<4x512xf32>
    %173 = vector.extract_strided_slice %5 {offsets = [0, 14], sizes = [4, 1], strides = [1, 1]} : vector<4x32xf32> to vector<4x1xf32>
    %174 = vector.extract_strided_slice %87 {offsets = [14, 0], sizes = [1, 512], strides = [1, 1]} : vector<32x512xf32> to vector<1x512xf32>
    %175 = vector.broadcast %173 : vector<4x1xf32> to vector<4x512xf32>
    %176 = vector.broadcast %174 : vector<1x512xf32> to vector<4x512xf32>
    %177 = arith.mulf %175, %176 : vector<4x512xf32>
    %178 = arith.addf %172, %177 : vector<4x512xf32>
    %179 = vector.extract_strided_slice %5 {offsets = [0, 15], sizes = [4, 1], strides = [1, 1]} : vector<4x32xf32> to vector<4x1xf32>
    %180 = vector.extract_strided_slice %87 {offsets = [15, 0], sizes = [1, 512], strides = [1, 1]} : vector<32x512xf32> to vector<1x512xf32>
    %181 = vector.broadcast %179 : vector<4x1xf32> to vector<4x512xf32>
    %182 = vector.broadcast %180 : vector<1x512xf32> to vector<4x512xf32>
    %183 = arith.mulf %181, %182 : vector<4x512xf32>
    %184 = arith.addf %178, %183 : vector<4x512xf32>
    %185 = vector.extract_strided_slice %5 {offsets = [0, 16], sizes = [4, 1], strides = [1, 1]} : vector<4x32xf32> to vector<4x1xf32>
    %186 = vector.extract_strided_slice %87 {offsets = [16, 0], sizes = [1, 512], strides = [1, 1]} : vector<32x512xf32> to vector<1x512xf32>
    %187 = vector.broadcast %185 : vector<4x1xf32> to vector<4x512xf32>
    %188 = vector.broadcast %186 : vector<1x512xf32> to vector<4x512xf32>
    %189 = arith.mulf %187, %188 : vector<4x512xf32>
    %190 = arith.addf %184, %189 : vector<4x512xf32>
    %191 = vector.extract_strided_slice %5 {offsets = [0, 17], sizes = [4, 1], strides = [1, 1]} : vector<4x32xf32> to vector<4x1xf32>
    %192 = vector.extract_strided_slice %87 {offsets = [17, 0], sizes = [1, 512], strides = [1, 1]} : vector<32x512xf32> to vector<1x512xf32>
    %193 = vector.broadcast %191 : vector<4x1xf32> to vector<4x512xf32>
    %194 = vector.broadcast %192 : vector<1x512xf32> to vector<4x512xf32>
    %195 = arith.mulf %193, %194 : vector<4x512xf32>
    %196 = arith.addf %190, %195 : vector<4x512xf32>
    %197 = vector.extract_strided_slice %5 {offsets = [0, 18], sizes = [4, 1], strides = [1, 1]} : vector<4x32xf32> to vector<4x1xf32>
    %198 = vector.extract_strided_slice %87 {offsets = [18, 0], sizes = [1, 512], strides = [1, 1]} : vector<32x512xf32> to vector<1x512xf32>
    %199 = vector.broadcast %197 : vector<4x1xf32> to vector<4x512xf32>
    %200 = vector.broadcast %198 : vector<1x512xf32> to vector<4x512xf32>
    %201 = arith.mulf %199, %200 : vector<4x512xf32>
    %202 = arith.addf %196, %201 : vector<4x512xf32>
    %203 = vector.extract_strided_slice %5 {offsets = [0, 19], sizes = [4, 1], strides = [1, 1]} : vector<4x32xf32> to vector<4x1xf32>
    %204 = vector.extract_strided_slice %87 {offsets = [19, 0], sizes = [1, 512], strides = [1, 1]} : vector<32x512xf32> to vector<1x512xf32>
    %205 = vector.broadcast %203 : vector<4x1xf32> to vector<4x512xf32>
    %206 = vector.broadcast %204 : vector<1x512xf32> to vector<4x512xf32>
    %207 = arith.mulf %205, %206 : vector<4x512xf32>
    %208 = arith.addf %202, %207 : vector<4x512xf32>
    %209 = vector.extract_strided_slice %5 {offsets = [0, 20], sizes = [4, 1], strides = [1, 1]} : vector<4x32xf32> to vector<4x1xf32>
    %210 = vector.extract_strided_slice %87 {offsets = [20, 0], sizes = [1, 512], strides = [1, 1]} : vector<32x512xf32> to vector<1x512xf32>
    %211 = vector.broadcast %209 : vector<4x1xf32> to vector<4x512xf32>
    %212 = vector.broadcast %210 : vector<1x512xf32> to vector<4x512xf32>
    %213 = arith.mulf %211, %212 : vector<4x512xf32>
    %214 = arith.addf %208, %213 : vector<4x512xf32>
    %215 = vector.extract_strided_slice %5 {offsets = [0, 21], sizes = [4, 1], strides = [1, 1]} : vector<4x32xf32> to vector<4x1xf32>
    %216 = vector.extract_strided_slice %87 {offsets = [21, 0], sizes = [1, 512], strides = [1, 1]} : vector<32x512xf32> to vector<1x512xf32>
    %217 = vector.broadcast %215 : vector<4x1xf32> to vector<4x512xf32>
    %218 = vector.broadcast %216 : vector<1x512xf32> to vector<4x512xf32>
    %219 = arith.mulf %217, %218 : vector<4x512xf32>
    %220 = arith.addf %214, %219 : vector<4x512xf32>
    %221 = vector.extract_strided_slice %5 {offsets = [0, 22], sizes = [4, 1], strides = [1, 1]} : vector<4x32xf32> to vector<4x1xf32>
    %222 = vector.extract_strided_slice %87 {offsets = [22, 0], sizes = [1, 512], strides = [1, 1]} : vector<32x512xf32> to vector<1x512xf32>
    %223 = vector.broadcast %221 : vector<4x1xf32> to vector<4x512xf32>
    %224 = vector.broadcast %222 : vector<1x512xf32> to vector<4x512xf32>
    %225 = arith.mulf %223, %224 : vector<4x512xf32>
    %226 = arith.addf %220, %225 : vector<4x512xf32>
    %227 = vector.extract_strided_slice %5 {offsets = [0, 23], sizes = [4, 1], strides = [1, 1]} : vector<4x32xf32> to vector<4x1xf32>
    %228 = vector.extract_strided_slice %87 {offsets = [23, 0], sizes = [1, 512], strides = [1, 1]} : vector<32x512xf32> to vector<1x512xf32>
    %229 = vector.broadcast %227 : vector<4x1xf32> to vector<4x512xf32>
    %230 = vector.broadcast %228 : vector<1x512xf32> to vector<4x512xf32>
    %231 = arith.mulf %229, %230 : vector<4x512xf32>
    %232 = arith.addf %226, %231 : vector<4x512xf32>
    %233 = vector.extract_strided_slice %5 {offsets = [0, 24], sizes = [4, 1], strides = [1, 1]} : vector<4x32xf32> to vector<4x1xf32>
    %234 = vector.extract_strided_slice %87 {offsets = [24, 0], sizes = [1, 512], strides = [1, 1]} : vector<32x512xf32> to vector<1x512xf32>
    %235 = vector.broadcast %233 : vector<4x1xf32> to vector<4x512xf32>
    %236 = vector.broadcast %234 : vector<1x512xf32> to vector<4x512xf32>
    %237 = arith.mulf %235, %236 : vector<4x512xf32>
    %238 = arith.addf %232, %237 : vector<4x512xf32>
    %239 = vector.extract_strided_slice %5 {offsets = [0, 25], sizes = [4, 1], strides = [1, 1]} : vector<4x32xf32> to vector<4x1xf32>
    %240 = vector.extract_strided_slice %87 {offsets = [25, 0], sizes = [1, 512], strides = [1, 1]} : vector<32x512xf32> to vector<1x512xf32>
    %241 = vector.broadcast %239 : vector<4x1xf32> to vector<4x512xf32>
    %242 = vector.broadcast %240 : vector<1x512xf32> to vector<4x512xf32>
    %243 = arith.mulf %241, %242 : vector<4x512xf32>
    %244 = arith.addf %238, %243 : vector<4x512xf32>
    %245 = vector.extract_strided_slice %5 {offsets = [0, 26], sizes = [4, 1], strides = [1, 1]} : vector<4x32xf32> to vector<4x1xf32>
    %246 = vector.extract_strided_slice %87 {offsets = [26, 0], sizes = [1, 512], strides = [1, 1]} : vector<32x512xf32> to vector<1x512xf32>
    %247 = vector.broadcast %245 : vector<4x1xf32> to vector<4x512xf32>
    %248 = vector.broadcast %246 : vector<1x512xf32> to vector<4x512xf32>
    %249 = arith.mulf %247, %248 : vector<4x512xf32>
    %250 = arith.addf %244, %249 : vector<4x512xf32>
    %251 = vector.extract_strided_slice %5 {offsets = [0, 27], sizes = [4, 1], strides = [1, 1]} : vector<4x32xf32> to vector<4x1xf32>
    %252 = vector.extract_strided_slice %87 {offsets = [27, 0], sizes = [1, 512], strides = [1, 1]} : vector<32x512xf32> to vector<1x512xf32>
    %253 = vector.broadcast %251 : vector<4x1xf32> to vector<4x512xf32>
    %254 = vector.broadcast %252 : vector<1x512xf32> to vector<4x512xf32>
    %255 = arith.mulf %253, %254 : vector<4x512xf32>
    %256 = arith.addf %250, %255 : vector<4x512xf32>
    %257 = vector.extract_strided_slice %5 {offsets = [0, 28], sizes = [4, 1], strides = [1, 1]} : vector<4x32xf32> to vector<4x1xf32>
    %258 = vector.extract_strided_slice %87 {offsets = [28, 0], sizes = [1, 512], strides = [1, 1]} : vector<32x512xf32> to vector<1x512xf32>
    %259 = vector.broadcast %257 : vector<4x1xf32> to vector<4x512xf32>
    %260 = vector.broadcast %258 : vector<1x512xf32> to vector<4x512xf32>
    %261 = arith.mulf %259, %260 : vector<4x512xf32>
    %262 = arith.addf %256, %261 : vector<4x512xf32>
    %263 = vector.extract_strided_slice %5 {offsets = [0, 29], sizes = [4, 1], strides = [1, 1]} : vector<4x32xf32> to vector<4x1xf32>
    %264 = vector.extract_strided_slice %87 {offsets = [29, 0], sizes = [1, 512], strides = [1, 1]} : vector<32x512xf32> to vector<1x512xf32>
    %265 = vector.broadcast %263 : vector<4x1xf32> to vector<4x512xf32>
    %266 = vector.broadcast %264 : vector<1x512xf32> to vector<4x512xf32>
    %267 = arith.mulf %265, %266 : vector<4x512xf32>
    %268 = arith.addf %262, %267 : vector<4x512xf32>
    %269 = vector.extract_strided_slice %5 {offsets = [0, 30], sizes = [4, 1], strides = [1, 1]} : vector<4x32xf32> to vector<4x1xf32>
    %270 = vector.extract_strided_slice %87 {offsets = [30, 0], sizes = [1, 512], strides = [1, 1]} : vector<32x512xf32> to vector<1x512xf32>
    %271 = vector.broadcast %269 : vector<4x1xf32> to vector<4x512xf32>
    %272 = vector.broadcast %270 : vector<1x512xf32> to vector<4x512xf32>
    %273 = arith.mulf %271, %272 : vector<4x512xf32>
    %274 = arith.addf %268, %273 : vector<4x512xf32>
    %275 = vector.extract_strided_slice %5 {offsets = [0, 31], sizes = [4, 1], strides = [1, 1]} : vector<4x32xf32> to vector<4x1xf32>
    %276 = vector.extract_strided_slice %87 {offsets = [31, 0], sizes = [1, 512], strides = [1, 1]} : vector<32x512xf32> to vector<1x512xf32>
    %277 = vector.broadcast %275 : vector<4x1xf32> to vector<4x512xf32>
    %278 = vector.broadcast %276 : vector<1x512xf32> to vector<4x512xf32>
    %279 = arith.mulf %277, %278 : vector<4x512xf32>
    %280 = arith.addf %274, %279 : vector<4x512xf32>
    %281 = vector.broadcast %10 : f32 to vector<4x256xf32>
    %282 = arith.mulf %281, %25 : vector<4x256xf32>
    %283 = vector.extract_strided_slice %280 {offsets = [0, 0], sizes = [4, 256], strides = [1, 1]} : vector<4x512xf32> to vector<4x256xf32>
    %284 = vector.broadcast %12 : f32 to vector<4x256xf32>
    %285 = arith.mulf %284, %283 : vector<4x256xf32>
    %286 = arith.addf %282, %285 : vector<4x256xf32>
    %c0_26 = arith.constant 0 : index
    %c0_27 = arith.constant 0 : index
    %c0_28 = arith.constant 0 : index
    %287 = vector.load %arg6[%c0_26, %c0_27, %c0_28] : memref<2x4x256xf32, #tpu.memory_space<vmem>>, vector<1x4x256xf32>
    %288 = vector.shape_cast %287 : vector<1x4x256xf32> to vector<4x256xf32>
    %289 = vector.shape_cast %286 : vector<4x256xf32> to vector<1x4x256xf32>
    tpu.vector_store %arg6[%c0_26, %c0_27, %c0_28], %289 {strides = array<i32>} : memref<2x4x256xf32, #tpu.memory_space<vmem>>, vector<1x4x256xf32>,
    %290 = vector.broadcast %19 : f32 to vector<4x256xf32>
    %291 = arith.mulf %290, %27 : vector<4x256xf32>
    %292 = vector.extract_strided_slice %280 {offsets = [0, 256], sizes = [4, 256], strides = [1, 1]} : vector<4x512xf32> to vector<4x256xf32>
    %293 = vector.broadcast %21 : f32 to vector<4x256xf32>
    %294 = arith.mulf %293, %292 : vector<4x256xf32>
    %295 = arith.addf %291, %294 : vector<4x256xf32>
    %c1_29 = arith.constant 1 : index
    %c0_30 = arith.constant 0 : index
    %c0_31 = arith.constant 0 : index
    %296 = vector.load %arg6[%c1_29, %c0_30, %c0_31] : memref<2x4x256xf32, #tpu.memory_space<vmem>>, vector<1x4x256xf32>
    %297 = vector.shape_cast %296 : vector<1x4x256xf32> to vector<4x256xf32>
    %298 = vector.shape_cast %295 : vector<4x256xf32> to vector<1x4x256xf32>
    tpu.vector_store %arg6[%c1_29, %c0_30, %c0_31], %298 {strides = array<i32>} : memref<2x4x256xf32, #tpu.memory_space<vmem>>, vector<1x4x256xf32>,
    return
  }
  func.func @transform_0(%arg0: i32, %arg1: memref<2xf32, #tpu.memory_space<smem>>) -> (i32, i32, i32) {
    %c0_i32 = arith.constant 0 : i32
    %c0_i32_0 = arith.constant 0 : i32
    %c0_i32_1 = arith.constant 0 : i32
    %c0_i32_2 = arith.constant 0 : i32
    return %c0_i32, %c0_i32_0, %c0_i32_1 : i32, i32, i32
  }
  func.func @transform_1(%arg0: i32, %arg1: memref<2xf32, #tpu.memory_space<smem>>) -> (i32, i32) {
    %c0_i32 = arith.constant 0 : i32
    %c0_i32_0 = arith.constant 0 : i32
    %c0_i32_1 = arith.constant 0 : i32
    return %c0_i32, %c0_i32_0 : i32, i32
  }
  func.func @transform_2(%arg0: i32, %arg1: memref<2xf32, #tpu.memory_space<smem>>) -> (i32, i32) {
    %c0_i32 = arith.constant 0 : i32
    %c0_i32_0 = arith.constant 0 : i32
    %c0_i32_1 = arith.constant 0 : i32
    return %c0_i32, %c0_i32_0 : i32, i32
  }
  func.func @transform_3(%arg0: i32, %arg1: memref<2xf32, #tpu.memory_space<smem>>) -> (i32, i32) {
    %c0_i32 = arith.constant 0 : i32
    %c0_i32_0 = arith.constant 0 : i32
    %c0_i32_1 = arith.constant 0 : i32
    return %c0_i32, %c0_i32_0 : i32, i32
  }
  func.func @transform_4(%arg0: i32, %arg1: memref<2xf32, #tpu.memory_space<smem>>) -> (i32, i32, i32) {
    %c0_i32 = arith.constant 0 : i32
    %c0_i32_0 = arith.constant 0 : i32
    %c0_i32_1 = arith.constant 0 : i32
    %c0_i32_2 = arith.constant 0 : i32
    return %c0_i32, %c0_i32_0, %c0_i32_1 : i32, i32, i32
  }
}

</mosaic_0001>

<bundles_post_ra>
// kernel: tpu_custom_call.1
= control target key start
LH: loop header
LB: loop body
LE: loop exit
PB: predicated region body
PF: predicated region fallthrough
CT: control target
= control target key end

     0   :  { %s3004_s0 = inlined_call_operand.vmem [shape: f32[2], index: 0, kind: input, shape index: {}]   ;;  %s3005_s1 = inlined_call_operand.vmem [shape: f32[2,4,256], index: 1, kind: input, shape index: {}]   ;;  %s3006_s2 = inlined_call_operand.vmem [shape: f32[32,4], index: 2, kind: input, shape index: {}]   ;;  %s3007_s3 = inlined_call_operand.vmem [shape: f32[4,32], index: 3, kind: input, shape index: {}]   ;;  %s3008_s4 = inlined_call_operand.vmem [shape: f32[32,4], index: 4, kind: input, shape index: {}]   ;;  %s3009_s5 = inlined_call_operand.hbm [shape: f32[2,4,256], index: 5, kind: output, shape index: {}]  }
   0x1   :  { %s10_s20 = sshll.u32 %s3004_s0, 4  ;;  %s11_s20 = int_to_ptr.vmem [resolvable:$true] %s10_s20 }
   0x2   :  { %s1790_s21 = scalar_lea.vmem %s11_s20, 16  ;;  %p1795_p1 = scmp.lt.s32.totalorder %s11_s20, %s11_s20 }
   0x3   :  { %p1791_p0 = scmp.ne.s32.totalorder %s11_s20, %s1790_s21  ;;  %p1796_p2 = scmp.lt.s32.totalorder %s1790_s21, %s1790_s21 }
   0x5   :  { %p1797_p3 = por %p1796_p2, %p1795_p1 }
   0x7   :  { %p1798_p4 = pnand %p1797_p3, %p1791_p0 }
   0x9   :  { %1801 = shalt.err (!%p1798_p4)  }
   0xa   :  { %s1828_s22 = smov [#allocation3]  }
   0xb   :  { %13 = dma.vmem_to_smem %s11_s20, 16, %s1828_s22, [#allocation2] }
   0xc   :  { %1824 = dma.done.wait [#allocation2], 16 }
   0xd   :  { %1825 = vsyncadd [#allocation2], 4294967280 }
   0xe   :  { %15 = sfence }
   0xf   :  { %v1901_v0 = vld [vmem:[%s3008_s4 + $0x10] sm:$0xff]  ;;  %v1906_v1 = vld [vmem:[%s3008_s4] sm:$0xff]  ;;  %s1829_s26 = smov 127   ;;  %s1910_s27 = sld [smem:[#allocation3]]  ;;  %v1915_v2 = vld [vmem:[%s3008_s4 + $0x18] sm:$0xff]  ;;  %v1830_v4 = vmov 0  }
  0x10   :  { %95 = vrot.lane.b32.xlu1 %v1901_v0, %s1829_s26  ;;  %91 = vrot.lane.b32.xlu0 %v1906_v1, %s1829_s26  ;;  %v1920_v3 = vld [vmem:[%s3008_s4 + $0x8] sm:$0xff]  ;;  %s1924_s7 = sld [smem:[#allocation3 + $0x1]] }
  0x11   :  { %1633 = vset.pattern.permute.xlu0 %v1830_v4  ;;  %1632 = vset.pattern.permute.xlu1 %v1830_v4 }
  0x12   :  { %16 = vsyncpa [#allocation5], 0  ;;  %v30_v5 = vld [vmem:[%s3006_s2] sm:$0xff]  ;;  %v31_v6 = vld [vmem:[%s3006_s2 + $0x8] sm:$0xff]  ;;  %v1831_v12 = vmov 3   ;;  %v3010_v16 = vmov 1   ;;  %v232_v51 = vlaneseq }
  0x13   :  { %v1943_v9 = vld [vmem:[%s3006_s2 + $0x10] sm:$0xff]  ;;  %v1950_v13 = vld [vmem:[%s3006_s2 + $0x18] sm:$0xff]  ;;  %v1833_v23 = vmov 2   ;;  %v69_v24 = vld [vmem:[%s3005_s1] sm:$0xff] }
  0x14   :  { %97 = vrot.lane.b32.xlu1 %v1915_v2, %s1829_s26  ;;  %93 = vrot.lane.b32.xlu0 %v1920_v3, %s1829_s26  ;;  %v1558_v27 = vld [vmem:[%s3005_s1 + $0x8] sm:$0xff]  ;;  %v2022_v54 = vshrl.u32 %v232_v51, 7 }
  0x15   :  { %s36_s12 = smul.f32 %s1910_s27, %s1910_s27  ;;  %v47_v7 = vstv %s1910_s27 }
  0x16   :  { %1682 = vlog2.f32 %v47_v7  ;;  %s53_s13 = smul.f32 %s1924_s7, %s1924_s7  ;;  %v64_v8 = vstv %s1924_s7  ;;  %v2029_v61 = vsub.s32 0, %v2022_v54 }
  0x17   :  { %s37_s14 = sadd.f32 0.25, %s36_s12  ;;  %1684 = vlog2.f32 %v64_v8  ;;  %s45_s2 = smul.f32 0.5, %s1910_s27 }
  0x18   :  { %214 = vperm.xlu1 %1632, %v30_v5   ;;  %219 = vperm.xlu0 %1633, %v31_v6   ;;  %s54_s17 = sadd.f32 0.25, %s53_s13  ;;  %s62_s21 = smul.f32 0.5, %s1924_s7 }
  0x19   :  { %v38_v10 = vstv %s37_s14 }
  0x1a   :  { %1686 = vrsqrt.f32 %v38_v10  ;;  %v55_v11 = vstv %s54_s17 }
  0x1b   :  { %1688 = vrcp.f32 %v38_v10 }
  0x1c   :  { %224 = vperm.xlu1 %1632, %v1943_v9   ;;  %1636 = vset.pattern.permute.xlu0 %v1831_v12  ;;  %1690 = vrsqrt.f32 %v55_v11 }
  0x1d   :  { %393 = vperm.xlu0 %1636, %v30_v5   ;;  %1692 = vrcp.f32 %v55_v11 }
  0x20   :  { %229 = vperm.xlu1 %1632, %v1950_v13   ;;  %v1683_v14 = vpop.eup %1682 }
  0x21   :  { %405 = vperm.xlu0 %1636, %v1950_v13   ;;  %v1685_v15 = vpop.eup %1684  ;;  %v49_v17 = vmul.f32 0.6931472, %v1683_v14 }
  0x22   :  { %v66_v21 = vmul.f32 0.6931472, %v1685_v15  ;;  %v2048_v15 = vsub.s32 3, %v2022_v54 }
  0x24   :  { %1634 = vset.pattern.permute.xlu1 %v3010_v16  ;;  %v1687_v18 = vpop.eup %1686  ;;  %3018 = vst [vmem:[#allocation10_spill] sm:$0xff] %v2048_v15 }
  0x25   :  { %269 = vperm.xlu1 %1634, %v31_v6   ;;  %1642 = vset.pattern.permute.xlu0 %v3010_v16  ;;  %v1689_v19 = vpop.eup %1688  ;;  %1583 = vpush %v1687_v18 }
  0x26   :  { %265 = vperm.xlu0 %1642, %v30_v5   ;;  %v1691_v20 = vpop.eup %1690  ;;  %1585 = vpush %v1689_v19 }
  0x27   :  { %v1693_v22 = vpop.eup %1692  ;;  %1587 = vpush %v49_v17 }
  0x28   :  { %1589 = vpush %v1691_v20 }
  0x29   :  { %273 = vperm.xlu1 %1634, %v1943_v9   ;;  %1591 = vpush %v1693_v22 }
  0x2a   :  { %1593 = vpush %v66_v21 }
  0x2d   :  { %1635 = vset.pattern.permute.xlu1 %v1833_v23 }
  0x2e   :  { %329 = vperm.xlu1 %1635, %v30_v5  }
  0x32   :  { %1637 = vset.pattern.permute.xlu1 %v1830_v4 }
  0x33   :  { %457 = vperm.xlu1 %1637, %v1906_v1  }
  0x37   :  { %1638 = vset.pattern.permute.xlu1 %v1833_v23 }
  0x38   :  { %333 = vperm.xlu1 %1638, %v31_v6  }
  0x3c   :  { %1639 = vset.pattern.permute.xlu1 %v1831_v12 }
  0x3d   :  { %397 = vperm.xlu1 %1639, %v31_v6  }
  0x41   :  { %1640 = vset.pattern.permute.xlu1 %v1830_v4 }
  0x42   :  { %461 = vperm.xlu1 %1640, %v1920_v3  }
  0x46   :  { %1641 = vset.pattern.permute.xlu1 %v1831_v12 }
  0x47   :  { %401 = vperm.xlu1 %1641, %v1943_v9  }
  0x4b   :  { %1643 = vset.pattern.permute.xlu1 %v1830_v4 }
  0x4c   :  { %465 = vperm.xlu1 %1643, %v1901_v0  }
  0x50   :  { %1644 = vset.pattern.permute.xlu1 %v3010_v16 }
  0x56   :  { %s1970_s20 = spop %1583 }
  0x57   :  { %s1974_s22 = smul.f32 %s1970_s20, %s45_s2  ;;  %s1586_s23 = spop %1585  ;;  %v72_v52 = vstv %s1970_s20 }
  0x58   :  { %s44_s24 = smul.f32 0.25, %s1586_s23  ;;  %s1588_s25 = spop %1587  ;;  %v2024_v55 = vmul.f32 %v72_v52, %v69_v24 }
  0x59   :  { %s1976_s0 = spop %1589  ;;  %s51_s8 = smul.f32 0.25, %s1588_s25 }
  0x5a   :  { %v1518_v25 = vstv %s44_s24  ;;  %s1982_s29 = smul.f32 %s1976_s0, %s62_s21  ;;  %s1592_s27 = spop %1591  ;;  %v74_v53 = vstv %s1976_s0  ;;  %v2033_v62 = vcombine.high %v2024_v55, %v2024_v55  ;;  %v2045_v14 = vrot.slane %v2024_v55, %v2029_v61 }
  0x5b   :  { %v1984_v26 = vmul.f32 %v1518_v25, %v69_v24  ;;  %s61_s30 = smul.f32 0.25, %s1592_s27  ;;  %s1594_s9 = spop %1593  ;;  %v82_v30 = vstv %s51_s8  ;;  %v2026_v56 = vmul.f32 %v1558_v27, %v74_v53 }
  0x5c   :  { %s68_s10 = smul.f32 0.25, %s1594_s9  ;;  %v85_v32 = vmul.f32 %v82_v30, %v1901_v0  ;;  %v83_v33 = vmul.f32 %v82_v30, %v1906_v1  ;;  %v86_v39 = vmul.f32 %v82_v30, %v1915_v2  ;;  %v84_v40 = vmul.f32 %v82_v30, %v1920_v3 }
  0x5d   :  { %3016 = vst [vmem:[#allocation8_spill] sm:$0xff] %v1984_v26  ;;  %v1529_v28 = vstv %s61_s30  ;;  %v2037_v63 = vcombine.high %v2026_v56, %v2026_v56  ;;  %v2052_v17 = vrot.slane %v2033_v62, %v2029_v61  ;;  %v2056_v18 = vrot.slane %v2026_v56, %v2029_v61 }
  0x5e   :  { %v1989_v29 = vmul.f32 %v1558_v27, %v1529_v28  ;;  %v1991_v31 = vstv %s68_s10 }
  0x5f   :  { %v156_v36 = vmul.f32 %v1991_v31, %v1906_v1  ;;  %v2060_v19 = vrot.slane %v2037_v63, %v2029_v61  ;;  %v157_v21 = vmul.f32 %v1991_v31, %v1920_v3  ;;  %v2078_v3 = vrot.slane %v2033_v62, %v2048_v15 }
  0x60   :  { %3017 = vst [vmem:[#allocation9_spill] sm:$0xff] %v1989_v29 }
  0x82   :  { %v1995_v34 = vpop.permute.xlu1 %95  ;;  %v92_v35 = vpop.permute.xlu0 %91 }
  0x83   :  { %v2000_v37 = vadd.f32 %v1995_v34, %v85_v32  ;;  %v2002_v38 = vadd.f32 %v92_v35, %v83_v33  ;;  %v2008_v43 = vadd.f32 %v156_v36, %v92_v35  ;;  %v2072_v32 = vrot.slane %v2024_v55, %v2048_v15 }
  0x84   :  { %v2082_v35 = vrot.slane %v2026_v56, %v2048_v15  ;;  %v2086_v36 = vrot.slane %v2037_v63, %v2048_v15 }
  0x85   :  { %v1559_v41 = vmul.f32 -1.442695, %v2002_v38  ;;  %v1561_v42 = vmul.f32 -1.442695, %v2000_v37  ;;  %v1563_v50 = vmul.f32 -1.442695, %v2008_v43 }
  0x86   :  { %v2010_v44 = vpop.permute.xlu1 %97  ;;  %v94_v45 = vpop.permute.xlu0 %93 }
  0x87   :  { %v2013_v46 = vadd.f32 %v2010_v44, %v86_v39  ;;  %v2015_v47 = vadd.f32 %v94_v45, %v84_v40  ;;  %1694 = vpow2.f32 %v1559_v41  ;;  %v2074_v33 = vadd.f32 %v157_v21, %v94_v45 }
  0x88   :  { %1696 = vpow2.f32 %v1561_v42 }
  0x89   :  { %v1562_v48 = vmul.f32 -1.442695, %v2013_v46  ;;  %v1560_v49 = vmul.f32 -1.442695, %v2015_v47 }
  0x8b   :  { %1698 = vpow2.f32 %v1562_v48 }
  0x8c   :  { %1700 = vpow2.f32 %v1560_v49 }
  0x8d   :  { %1702 = vpow2.f32 %v1563_v50 }
  0x91   :  { %v1695_v57 = vpop.eup %1694 }
  0x92   :  { %v1697_v58 = vpop.eup %1696  ;;  %v119_v59 = vadd.f32 1.0, %v1695_v57 }
  0x93   :  { %v121_v6 = vadd.f32 1.0, %v1697_v58 }
  0x94   :  { %1704 = vrcp.f32 %v119_v59  ;;  %v2114_v59 = vsub.s32 1, %v2022_v54 }
  0x95   :  { %v1699_v60 = vpop.eup %1698 }
  0x96   :  { %v122_v1 = vadd.f32 1.0, %v1699_v60  ;;  %v1701_v5 = vpop.eup %1700  ;;  %3021 = vst [vmem:[#allocation13_spill] sm:$0xff] %v2114_v59  ;;  %v2131_v21 = vrot.slane %v2026_v56, %v2114_v59 }
  0x97   :  { %v2039_v7 = vpop.permute.xlu1 %214  ;;  %v2041_v8 = vpop.permute.xlu0 %219  ;;  %v120_v11 = vadd.f32 1.0, %v1701_v5 }
  0x98   :  { %v1703_v10 = vpop.eup %1702  ;;  %1706 = vrcp.f32 %v122_v1  ;;  %v1564_v1 = vmul.f32 -1.442695, %v2074_v33 }
  0x99   :  { %1708 = vrcp.f32 %v120_v11  ;;  %v176_v20 = vadd.f32 1.0, %v1703_v10  ;;  %v2123_v11 = vrot.slane %v2024_v55, %v2114_v59 }
  0x9a   :  { %1710 = vrcp.f32 %v121_v6 }
  0x9b   :  { %v225_v22 = vpop.permute.xlu1 %224  ;;  %1712 = vrcp.f32 %v176_v20  ;;  %v2127_v20 = vrot.slane %v2033_v62, %v2114_v59 }
  0x9c   :  { %v256_v24 = vmul.f32 %v2045_v14, %v225_v22  ;;  %v257_v25 = vmul.f32 %v2052_v17, %v225_v22  ;;  %v258_v27 = vmul.f32 %v2056_v18, %v225_v22  ;;  %v259_v28 = vmul.f32 %v2060_v19, %v225_v22  ;;  %v2068_v30 = vpop.permute.xlu0 %393 }
  0x9d   :  { %1714 = vpow2.f32 %v1564_v1  ;;  %v158_v1 = vmul.f32 %v1991_v31, %v1901_v0  ;;  %v159_v0 = vmul.f32 %v1991_v31, %v1915_v2  ;;  %v3022_v31 = vmov 1  }
  0x9e   :  { %v1705_v40 = vpop.eup %1704 }
  0x9f   :  { %v230_v39 = vpop.permute.xlu1 %229  ;;  %v131_v49 = vmul.f32 %v1705_v40, %v2002_v38  ;;  %v162_v16 = vadd.f32 %v158_v1, %v1995_v34 }
  0xa0   :  { %v2089_v41 = vmul.f32 %v2045_v14, %v230_v39  ;;  %v2092_v42 = vmul.f32 %v2052_v17, %v230_v39  ;;  %v2095_v45 = vmul.f32 %v2056_v18, %v230_v39  ;;  %v406_v48 = vpop.permute.xlu0 %405  ;;  %v2099_v50 = vmul.f32 %v2060_v19, %v230_v39 }
  0xa1   :  { %v2102_v51 = vmul.f32 %v2072_v32, %v406_v48  ;;  %v2105_v52 = vmul.f32 %v2078_v3, %v406_v48  ;;  %v2108_v57 = vmul.f32 %v2082_v35, %v406_v48  ;;  %v2111_v58 = vmul.f32 %v2086_v36, %v406_v48  ;;  %137 = vperm.xlu0 %1642, %v131_v49  }
  0xa2   :  { %v1707_v53 = vpop.eup %1706 }
  0xa3   :  { %3019 = vst [vmem:[#allocation11_spill] sm:$0xff] %v2108_v57  ;;  %3020 = vst [vmem:[#allocation12_spill] sm:$0xff] %v2111_v58  ;;  %v1709_v38 = vpop.eup %1708  ;;  %v134_v60 = vmul.f32 %v1707_v53, %v2013_v46  ;;  %v2135_v46 = vrot.slane %v2037_v63, %v2114_v59 }
  0xa4   :  { %v2118_v5 = vpop.permute.xlu1 %269  ;;  %v1711_v6 = vpop.eup %1710  ;;  %v132_v10 = vmul.f32 %v1709_v38, %v2015_v47  ;;  %v29_v38 = vld [vmem:[%s3008_s4] sm:$0xf] }
  0xa5   :  { %152 = vperm.xlu0 %1642, %v134_v60   ;;  %v133_v22 = vmul.f32 %v1711_v6, %v2000_v37  ;;  %v1713_v49 = vpop.eup %1712 }
  0xa6   :  { %142 = vperm.xlu1 %1644, %v132_v10  }
  0xa8   :  { %v274_v47 = vpop.permute.xlu1 %273 }
  0xa9   :  { %v304_v39 = vmul.f32 %v2123_v11, %v274_v47  ;;  %v305_v40 = vmul.f32 %v2127_v20, %v274_v47  ;;  %v306_v48 = vmul.f32 %v2131_v21, %v274_v47  ;;  %v307_v53 = vmul.f32 %v2135_v46, %v274_v47  ;;  %1646 = vset.pattern.permute.xlu0 %v1831_v12 }
  0xaa   :  { %147 = vperm.xlu1 %1644, %v133_v22   ;;  %v188_v47 = vmul.f32 %v1713_v49, %v2008_v43  ;;  %643 = vperm.xlu0 %1646, %v29_v38   ;;  %v163_v43 = vadd.f32 %v159_v0, %v2010_v44  ;;  %v1839_v38 = vmov 8  }
  0xab   :  { %v2147_v60 = vadd.f32 %v304_v39, %v256_v24  ;;  %v2149_v10 = vadd.f32 %v305_v40, %v257_v25  ;;  %v2151_v37 = vadd.f32 %v306_v48, %v258_v27  ;;  %v2153_v6 = vadd.f32 %v307_v53, %v259_v28  ;;  %v2164_v24 = vld [vmem:[%s3007_s3] sm:$0xf]  ;;  %v1715_v25 = vpop.eup %1714  ;;  %s1862_s3 = smov [#allocation4]  }
  0xac   :  { %v1565_v27 = vmul.f32 -1.442695, %v162_v16  ;;  %v177_v34 = vadd.f32 1.0, %v1715_v25  ;;  %v1835_v28 = vmov 4   ;;  %v1836_v48 = vmov 6   ;;  %s1546_s13 = sshll.u32 %s1862_s3, 4  ;;  %s1547_s13 = int_to_ptr.vmem [resolvable:$true] %s1546_s13 }
  0xad   :  { %v1837_v53 = vmov 7   ;;  %v1842_v25 = vmov 16   ;;  %s1802_s14 = scalar_lea.vmem %s1547_s13, 256  ;;  %p1807_p6 = scmp.lt.s32.totalorder %s1547_s13, %s1547_s13 }
  0xae   :  { %194 = vperm.xlu1 %1644, %v188_v47   ;;  %1647 = vset.pattern.permute.xlu0 %v1833_v23  ;;  %1716 = vpow2.f32 %v1565_v27  ;;  %v1566_v23 = vmul.f32 -1.442695, %v163_v43  ;;  %v1840_v47 = vmov 13   ;;  %v1843_v27 = vmov 11   ;;  %p1803_p5 = scmp.ne.s32.totalorder %s1547_s13, %s1802_s14  ;;  %p1808_p7 = scmp.lt.s32.totalorder %s1802_s14, %s1802_s14 }
  0xaf   :  { %337 = vperm.xlu0 %1647, %v1943_v9   ;;  %1718 = vrcp.f32 %v177_v34  ;;  %v1834_v9 = vmov 5   ;;  %v1845_v34 = vmov 12  }
  0xb0   :  { %1720 = vpow2.f32 %v1566_v23  ;;  %v1847_v23 = vmov 14   ;;  %p1809_p8 = por %p1808_p7, %p1807_p6 }
  0xb2   :  { %1645 = vset.pattern.permute.xlu1 %v1830_v4  ;;  %p1810_p9 = pnand %p1809_p8, %p1803_p5 }
  0xb3   :  { %618 = vperm.xlu1 %1645, %v2164_v24   ;;  %341 = vperm.xlu0 %1647, %v1950_v13  }
  0xb7   :  { %1648 = vset.pattern.permute.xlu1 %v3022_v31  ;;  %679 = vperm.xlu0 %1647, %v2164_v24  }
  0xb8   :  { %651 = vperm.xlu1 %1648, %v2164_v24   ;;  %v1717_v44 = vpop.eup %1716 }
  0xb9   :  { %v1719_v22 = vpop.eup %1718  ;;  %v178_v39 = vadd.f32 1.0, %v1717_v44  ;;  %v1850_v44 = vmov 28  }
  0xba   :  { %v1721_v40 = vpop.eup %1720 }
  0xbb   :  { %1651 = vset.pattern.permute.xlu0 %v1834_v9  ;;  %1722 = vrcp.f32 %v178_v39  ;;  %v179_v49 = vadd.f32 1.0, %v1721_v40  ;;  %v1849_v9 = vmov 15   ;;  %v1853_v39 = vmov 18  }
  0xbc   :  { %1649 = vset.pattern.permute.xlu1 %v1831_v12  ;;  %763 = vperm.xlu0 %1651, %v2164_v24   ;;  %v189_v12 = vmul.f32 %v1719_v22, %v2074_v33  ;;  %v1852_v22 = vmov 31   ;;  %v1854_v40 = vmov 20  }
  0xbd   :  { %707 = vperm.xlu1 %1649, %v2164_v24   ;;  %1724 = vrcp.f32 %v179_v49 }
  0xc0   :  { %1652 = vset.pattern.permute.xlu0 %v3022_v31 }
  0xc1   :  { %1650 = vset.pattern.permute.xlu1 %v1835_v28  ;;  %277 = vperm.xlu0 %1652, %v1950_v13   ;;  %v1838_v13 = vmov 10   ;;  %v1851_v28 = vmov 17  }
  0xc2   :  { %735 = vperm.xlu1 %1650, %v2164_v24  }
  0xc5   :  { %199 = vperm.xlu0 %1652, %v189_v12   ;;  %v1723_v33 = vpop.eup %1722  ;;  %v330_v12 = vpop.permute.xlu1 %329 }
  0xc6   :  { %1653 = vset.pattern.permute.xlu1 %v1836_v48  ;;  %v190_v1 = vmul.f32 %v1723_v33, %v162_v16  ;;  %v1844_v16 = vmov 19   ;;  %v1855_v48 = vmov 21   ;;  %v2212_v33 = vsub.s32 2, %v2022_v54 }
  0xc7   :  { %791 = vperm.xlu1 %1653, %v2164_v24  }
  0xc9   :  { %1655 = vset.pattern.permute.xlu0 %v1837_v53  ;;  %v2204_v49 = vpop.permute.xlu1 %457  ;;  %v1856_v53 = vmov 23  }
  0xca   :  { %819 = vperm.xlu0 %1655, %v2164_v24  }
  0xcb   :  { %1654 = vset.pattern.permute.xlu1 %v1830_v4  ;;  %v1725_v4 = vpop.eup %1724 }
  0xcc   :  { %469 = vperm.xlu1 %1654, %v1915_v2   ;;  %v191_v0 = vmul.f32 %v1725_v4, %v163_v43  ;;  %v1841_v2 = vmov 9   ;;  %v1846_v43 = vmov 22   ;;  %v1858_v4 = vmov 26  }
  0xce   :  { %1659 = vset.pattern.permute.xlu0 %v1838_v13  ;;  %v2208_v13 = vpop.permute.xlu1 %333 }
  0xcf   :  { %903 = vperm.xlu0 %1659, %v2164_v24  }
  0xd0   :  { %1656 = vset.pattern.permute.xlu1 %v1839_v38  ;;  %v1857_v38 = vmov 24  }
  0xd1   :  { %847 = vperm.xlu1 %1656, %v2164_v24  }
  0xd3   :  { %1662 = vset.pattern.permute.xlu0 %v1840_v47  ;;  %v2214_v47 = vpop.permute.xlu1 %397 }
  0xd4   :  { %987 = vperm.xlu0 %1662, %v2164_v24  }
  0xd5   :  { %1657 = vset.pattern.permute.xlu1 %v3022_v31 }
  0xd6   :  { %204 = vperm.xlu1 %1657, %v190_v1   ;;  %v266_v1 = vpop.permute.xlu0 %265 }
  0xd8   :  { %1665 = vset.pattern.permute.xlu0 %v3022_v31  ;;  %v1848_v31 = vmov 25  }
  0xd9   :  { %209 = vperm.xlu0 %1665, %v191_v0   ;;  %v296_v0 = vmul.f32 %v2123_v11, %v266_v1 }
  0xda   :  { %1658 = vset.pattern.permute.xlu1 %v1841_v2  ;;  %v297_v2 = vmul.f32 %v2127_v20, %v266_v1 }
  0xdb   :  { %875 = vperm.xlu1 %1658, %v2164_v24  }
  0xdd   :  { %1666 = vset.pattern.permute.xlu0 %v1842_v25  ;;  %v2220_v25 = vrot.slane %v2024_v55, %v2212_v33 }
  0xde   :  { %1071 = vperm.xlu0 %1666, %v2164_v24  }
  0xdf   :  { %1660 = vset.pattern.permute.xlu1 %v1843_v27  ;;  %v2224_v27 = vrot.slane %v2033_v62, %v2212_v33  ;;  %v300_v62 = vmul.f32 %v2123_v11, %v2118_v5 }
  0xe0   :  { %931 = vperm.xlu1 %1660, %v2164_v24  }
  0xe2   :  { %1669 = vset.pattern.permute.xlu0 %v1844_v16  ;;  %v248_v16 = vmul.f32 %v2045_v14, %v2039_v7 }
  0xe3   :  { %1155 = vperm.xlu0 %1669, %v2164_v24  }
  0xe4   :  { %1661 = vset.pattern.permute.xlu1 %v1845_v34  ;;  %v249_v34 = vmul.f32 %v2052_v17, %v2039_v7  ;;  %v312_v55 = vadd.f32 %v296_v0, %v248_v16  ;;  %v365_v0 = vmul.f32 %v2224_v27, %v2208_v13 }
  0xe5   :  { %959 = vperm.xlu1 %1661, %v2164_v24  }
  0xe7   :  { %1672 = vset.pattern.permute.xlu0 %v1846_v43  ;;  %v360_v43 = vmul.f32 %v2220_v25, %v330_v12 }
  0xe8   :  { %1239 = vperm.xlu0 %1672, %v2164_v24  }
  0xe9   :  { %1663 = vset.pattern.permute.xlu1 %v1847_v23  ;;  %v361_v23 = vmul.f32 %v2224_v27, %v330_v12 }
  0xea   :  { %1015 = vperm.xlu1 %1663, %v2164_v24  }
  0xec   :  { %1675 = vset.pattern.permute.xlu0 %v1848_v31  ;;  %v2233_v31 = vpop.permute.xlu1 %461 }
  0xed   :  { %1323 = vperm.xlu0 %1675, %v2164_v24  }
  0xee   :  { %1664 = vset.pattern.permute.xlu1 %v1849_v9  ;;  %v313_v9 = vadd.f32 %v297_v2, %v249_v34 }
  0xef   :  { %1043 = vperm.xlu1 %1664, %v2164_v24  }
  0xf0   :  { %v2256_v34 = vpop.permute.xlu1 %401 }
  0xf1   :  { %1678 = vset.pattern.permute.xlu0 %v1850_v44  ;;  %v1859_v44 = vmov 27  }
  0xf2   :  { %1407 = vperm.xlu0 %1678, %v2164_v24  }
  0xf3   :  { %1667 = vset.pattern.permute.xlu1 %v1851_v28  ;;  %v301_v28 = vmul.f32 %v2127_v20, %v2118_v5 }
  0xf4   :  { %1099 = vperm.xlu1 %1667, %v2164_v24  }
  0xf6   :  { %1681 = vset.pattern.permute.xlu0 %v1852_v22  ;;  %v376_v22 = vadd.f32 %v360_v43, %v312_v55  ;;  %v428_v43 = vmul.f32 %v2072_v32, %v2214_v47 }
  0xf7   :  { %1491 = vperm.xlu0 %1681, %v2164_v24  }
  0xf8   :  { %1668 = vset.pattern.permute.xlu1 %v1853_v39  ;;  %v377_v39 = vadd.f32 %v361_v23, %v313_v9  ;;  %v429_v23 = vmul.f32 %v2078_v3, %v2214_v47 }
  0xf9   :  { %1127 = vperm.xlu1 %1668, %v2164_v24  }
  0xfd   :  { %1670 = vset.pattern.permute.xlu1 %v1854_v40  ;;  %v252_v40 = vmul.f32 %v2045_v14, %v2041_v8  ;;  %v2254_v14 = vrot.slane %v2026_v56, %v2212_v33  ;;  %v2267_v56 = vrot.slane %v2037_v63, %v2212_v33 }
  0xfe   :  { %1183 = vperm.xlu1 %1670, %v2164_v24  }
  0xff   :  { %v316_v2 = vadd.f32 %v300_v62, %v252_v40  ;;  %v299_v62 = vmul.f32 %v2135_v46, %v266_v1  ;;  %v362_v29 = vmul.f32 %v2254_v14, %v330_v12 }
 0x102   :  { %1671 = vset.pattern.permute.xlu1 %v1855_v48  ;;  %v253_v48 = vmul.f32 %v2052_v17, %v2041_v8  ;;  %v1860_v17 = vmov 29  }
 0x103   :  { %1211 = vperm.xlu1 %1671, %v2164_v24  }
 0x104   :  { %v317_v16 = vadd.f32 %v301_v28, %v253_v48  ;;  %v250_v48 = vmul.f32 %v2056_v18, %v2039_v7 }
 0x106   :  { %v381_v40 = vadd.f32 %v365_v0, %v317_v16 }
 0x107   :  { %1673 = vset.pattern.permute.xlu1 %v1856_v53  ;;  %v424_v53 = vmul.f32 %v2072_v32, %v2068_v30 }
 0x108   :  { %1267 = vperm.xlu1 %1673, %v2164_v24  }
 0x109   :  { %v440_v55 = vadd.f32 %v424_v53, %v376_v22  ;;  %v363_v22 = vmul.f32 %v2267_v56, %v330_v12  ;;  %v1861_v53 = vmov 30  }
 0x10c   :  { %1674 = vset.pattern.permute.xlu1 %v1857_v38  ;;  %v425_v38 = vmul.f32 %v2078_v3, %v2068_v30 }
 0x10d   :  { %1295 = vperm.xlu1 %1674, %v2164_v24  }
 0x10e   :  { %v441_v9 = vadd.f32 %v425_v38, %v377_v39  ;;  %v2275_v39 = vpop.permute.xlu1 %465 }
 0x110   :  { %v473_v63 = vadd.f32 %v2204_v49, %v441_v9 }
 0x111   :  { %1676 = vset.pattern.permute.xlu1 %v1858_v4  ;;  %v364_v4 = vmul.f32 %v2220_v25, %v2208_v13 }
 0x112   :  { %1351 = vperm.xlu1 %1676, %v2164_v24  }
 0x113   :  { %v380_v28 = vadd.f32 %v364_v4, %v316_v2  ;;  %v445_v4 = vadd.f32 %v429_v23, %v381_v40  ;;  %v426_v23 = vmul.f32 %v2082_v35, %v2068_v30 }
 0x115   :  { %v444_v38 = vadd.f32 %v428_v43, %v380_v28  ;;  %v477_v43 = vadd.f32 %v2233_v31, %v445_v4 }
 0x116   :  { %1677 = vset.pattern.permute.xlu1 %v1859_v44  ;;  %v298_v44 = vmul.f32 %v2131_v21, %v266_v1  ;;  %v472_v1 = vadd.f32 %v2204_v49, %v440_v55 }
 0x117   :  { %1379 = vperm.xlu1 %1677, %v2164_v24   ;;  %v476_v55 = vadd.f32 %v2233_v31, %v444_v38  ;;  %v366_v38 = vmul.f32 %v2254_v14, %v2208_v13 }
 0x118   :  { %v314_v0 = vadd.f32 %v298_v44, %v250_v48 }
 0x11a   :  { %v378_v12 = vadd.f32 %v362_v29, %v314_v0  ;;  %v255_v0 = vmul.f32 %v2060_v19, %v2041_v8 }
 0x11b   :  { %1679 = vset.pattern.permute.xlu1 %v1860_v17  ;;  %v251_v17 = vmul.f32 %v2060_v19, %v2039_v7 }
 0x11c   :  { %1435 = vperm.xlu1 %1679, %v2164_v24   ;;  %v442_v48 = vadd.f32 %v426_v23, %v378_v12 }
 0x11d   :  { %v315_v2 = vadd.f32 %v299_v62, %v251_v17 }
 0x11f   :  { %v379_v58 = vadd.f32 %v363_v22, %v315_v2 }
 0x120   :  { %1680 = vset.pattern.permute.xlu1 %v1861_v53  ;;  %v138_v16 = vpop.permute.xlu0 %137 }
 0x121   :  { %1463 = vperm.xlu1 %1680, %v2164_v24   ;;  %v2280_v7 = vadd.f32 %v472_v1, %v138_v16  ;;  %v2282_v26 = vadd.f32 %v473_v63, %v138_v16  ;;  %v427_v24 = vmul.f32 %v2086_v36, %v2068_v30  ;;  %v302_v1 = vmul.f32 %v2131_v21, %v2118_v5 }
 0x122   :  { %v303_v30 = vmul.f32 %v2135_v46, %v2118_v5  ;;  %v254_v63 = vmul.f32 %v2056_v18, %v2041_v8  ;;  %v367_v18 = vmul.f32 %v2267_v56, %v2208_v13  ;;  %v433_v13 = vmul.f32 %v2078_v3, %v2256_v34 }
 0x123   :  { %v1567_v57 = vmul.f32 -1.442695, %v2280_v7  ;;  %v1568_v53 = vmul.f32 -1.442695, %v2282_v26  ;;  %v443_v17 = vadd.f32 %v427_v24, %v379_v58  ;;  %v474_v58 = vadd.f32 %v2204_v49, %v442_v48 }
 0x124   :  { %v2296_v62 = vpop.permute.xlu0 %152  ;;  %v318_v16 = vadd.f32 %v302_v1, %v254_v63  ;;  %v431_v3 = vmul.f32 %v2086_v36, %v2214_v47 }
 0x125   :  { %v143_v9 = vpop.permute.xlu1 %142  ;;  %1726 = vpow2.f32 %v1567_v57  ;;  %v475_v4 = vadd.f32 %v2204_v49, %v443_v17 }
 0x126   :  { %v2292_v44 = vadd.f32 %v476_v55, %v143_v9  ;;  %v2294_v29 = vadd.f32 %v477_v43, %v143_v9  ;;  %1728 = vpow2.f32 %v1568_v53  ;;  %v319_v53 = vadd.f32 %v303_v30, %v255_v0 }
 0x127   :  { %v432_v43 = vmul.f32 %v2072_v32, %v2256_v34  ;;  %v382_v8 = vadd.f32 %v366_v38, %v318_v16 }
 0x128   :  { %v1571_v28 = vmul.f32 -1.442695, %v2292_v44  ;;  %v1572_v40 = vmul.f32 -1.442695, %v2294_v29 }
 0x129   :  { %v2300_v22 = vpop.permute.xlu1 %147  ;;  %v2306_v57 = vpop.permute.xlu0 %643 }
 0x12a   :  { %1730 = vpow2.f32 %v1571_v28 }
 0x12b   :  { %1732 = vpow2.f32 %v1572_v40 }
 0x12d   :  { %v195_v2 = vpop.permute.xlu1 %194 }
 0x12e   :  { %v2316_v12 = vadd.f32 %v474_v58, %v195_v2  ;;  %v2318_v5 = vadd.f32 %v475_v4, %v195_v2  ;;  %v338_v9 = vpop.permute.xlu0 %337  ;;  %v430_v4 = vmul.f32 %v2082_v35, %v2214_v47 }
 0x12f   :  { %v1727_v55 = vpop.eup %1726  ;;  %v368_v28 = vmul.f32 %v2220_v25, %v338_v9  ;;  %v369_v40 = vmul.f32 %v2224_v27, %v338_v9  ;;  %v370_v48 = vmul.f32 %v2254_v14, %v338_v9  ;;  %v371_v32 = vmul.f32 %v2267_v56, %v338_v9 }
 0x130   :  { %v1569_v23 = vmul.f32 -1.442695, %v2316_v12  ;;  %v1570_v49 = vmul.f32 -1.442695, %v2318_v5  ;;  %v1729_v19 = vpop.eup %1728  ;;  %v552_v24 = vadd.f32 1.0, %v1727_v55 }
 0x131   :  { %v553_v17 = vadd.f32 1.0, %v1729_v19  ;;  %v384_v30 = vadd.f32 %v368_v28, %v2147_v60  ;;  %v385_v63 = vadd.f32 %v369_v40, %v2149_v10  ;;  %v386_v38 = vadd.f32 %v370_v48, %v2151_v37 }
 0x132   :  { %1734 = vpow2.f32 %v1569_v23  ;;  %v2332_v1 = vpop.permute.xlu1 %618  ;;  %v342_v0 = vpop.permute.xlu0 %341  ;;  %v387_v2 = vadd.f32 %v371_v32, %v2153_v6  ;;  %v434_v10 = vmul.f32 %v2082_v35, %v2256_v34  ;;  %v435_v37 = vmul.f32 %v2086_v36, %v2256_v34 }
 0x133   :  { %1736 = vrcp.f32 %v552_v24  ;;  %v448_v23 = vadd.f32 %v432_v43, %v384_v30  ;;  %v449_v60 = vadd.f32 %v433_v13, %v385_v63  ;;  %v383_v19 = vadd.f32 %v367_v18, %v319_v53 }
 0x134   :  { %v1731_v58 = vpop.eup %1730  ;;  %1738 = vrcp.f32 %v553_v17  ;;  %v450_v40 = vadd.f32 %v434_v10, %v386_v38  ;;  %v451_v48 = vadd.f32 %v435_v37, %v387_v2  ;;  %v2369_v63 = vsub.s32 5, %v2022_v54 }
 0x135   :  { %v1733_v16 = vpop.eup %1732  ;;  %v556_v55 = vadd.f32 1.0, %v1731_v58  ;;  %1740 = vpow2.f32 %v1570_v49  ;;  %v480_v47 = vadd.f32 %v2275_v39, %v448_v23  ;;  %v481_v24 = vadd.f32 %v2275_v39, %v449_v60 }
 0x136   :  { %v557_v9 = vadd.f32 1.0, %v1733_v16  ;;  %v2350_v6 = vpop.permute.xlu0 %679  ;;  %v446_v49 = vadd.f32 %v430_v4, %v382_v8  ;;  %v447_v43 = vadd.f32 %v431_v3, %v383_v19  ;;  %v2374_v38 = vsub.s32 4, %v2022_v54 }
 0x137   :  { %1742 = vrcp.f32 %v556_v55  ;;  %v2348_v28 = vpop.permute.xlu1 %651  ;;  %v2353_v35 = vadd.f32 %v480_v47, %v2300_v22  ;;  %v2356_v36 = vadd.f32 %v481_v24, %v2300_v22  ;;  %v2380_v3 = vsub.s32 6, %v2022_v54 }
 0x138   :  { %1744 = vrcp.f32 %v557_v9  ;;  %v2363_v17 = vadd.f32 %v2233_v31, %v446_v49  ;;  %v2366_v8 = vadd.f32 %v2233_v31, %v447_v43  ;;  %v2383_v31 = vsub.s32 7, %v2022_v54 }
 0x139   :  { %v1575_v34 = vmul.f32 -1.442695, %v2353_v35  ;;  %v1576_v53 = vmul.f32 -1.442695, %v2356_v36  ;;  %v2389_v55 = vmul.f32 %v2220_v25, %v342_v0  ;;  %v2392_v23 = vmul.f32 %v2224_v27, %v342_v0 }
 0x13a   :  { %v2397_v10 = vmul.f32 %v2254_v14, %v342_v0  ;;  %v2404_v25 = vmul.f32 %v2267_v56, %v342_v0  ;;  %v2411_v19 = vadd.f32 %v2275_v39, %v450_v40  ;;  %v2417_v49 = vadd.f32 %v2275_v39, %v451_v48 }
 0x13b   :  { %1746 = vpow2.f32 %v1575_v34  ;;  %v2371_v22 = vpop.permute.xlu0 %763 }
 0x13c   :  { %v1735_v18 = vpop.eup %1734  ;;  %v2360_v13 = vpop.permute.xlu1 %707  ;;  %1748 = vpow2.f32 %v1576_v53  ;;  %3023 = vst [vmem:[#allocation14_spill] sm:$0xff] %v2397_v10  ;;  %3024 = vst [vmem:[#allocation15_spill] sm:$0xff] %v2404_v25 }
 0x13d   :  { %v1737_v32 = vpop.eup %1736  ;;  %v554_v30 = vadd.f32 1.0, %v1735_v18  ;;  %3025 = vst [vmem:[#allocation16_spill] sm:$0xff] %v2417_v49 }
 0x13e   :  { %v1739_v58 = vpop.eup %1738  ;;  %v2377_v4 = vmul.f32 %v1737_v32, %v2280_v7 }
 0x13f   :  { %v1741_v2 = vpop.eup %1740  ;;  %v2386_v16 = vmul.f32 %v1739_v58, %v2282_v26  ;;  %1750 = vrcp.f32 %v554_v30 }
 0x140   :  { %v555_v7 = vadd.f32 1.0, %v1741_v2  ;;  %v624_v60 = vrot.slane %v2377_v4, %v2029_v61  ;;  %v657_v54 = vrot.slane %v2377_v4, %v2114_v59  ;;  %v685_v47 = vrot.slane %v2377_v4, %v2212_v33  ;;  %v278_v24 = vpop.permute.xlu0 %277 }
 0x141   :  { %v1743_v37 = vpop.eup %1742  ;;  %v628_v26 = vrot.slane %v2386_v16, %v2029_v61  ;;  %v661_v27 = vrot.slane %v2386_v16, %v2114_v59  ;;  %v2408_v9 = vpop.permute.xlu1 %735  ;;  %v689_v40 = vrot.slane %v2386_v16, %v2212_v33  ;;  %v713_v34 = vrot.slane %v2377_v4, %v2048_v15 }
 0x142   :  { %1752 = vrcp.f32 %v555_v7  ;;  %v637_v14 = vmul.f32 %v624_v60, %v2332_v1  ;;  %v1745_v56 = vpop.eup %1744  ;;  %v2420_v0 = vmul.f32 %v1743_v37, %v2292_v44  ;;  %v670_v18 = vmul.f32 %v657_v54, %v2348_v28 }
 0x143   :  { %v638_v43 = vmul.f32 %v628_v26, %v2332_v1  ;;  %v671_v32 = vmul.f32 %v661_v27, %v2348_v28  ;;  %v717_v39 = vrot.slane %v2386_v16, %v2048_v15  ;;  %v769_v48 = vrot.slane %v2377_v4, %v2369_v63 }
 0x144   :  { %v646_v53 = vadd.f32 %v2306_v57, %v637_v14  ;;  %v773_v30 = vrot.slane %v2386_v16, %v2369_v63  ;;  %v741_v58 = vrot.slane %v2377_v4, %v2374_v38  ;;  %v2440_v2 = vmul.f32 %v1745_v56, %v2294_v29 }
 0x145   :  { %v647_v44 = vadd.f32 %v2306_v57, %v638_v43  ;;  %v698_v60 = vmul.f32 %v685_v47, %v2350_v6  ;;  %v308_v54 = vmul.f32 %v2123_v11, %v278_v24  ;;  %v1747_v26 = vpop.eup %1746  ;;  %v699_v14 = vmul.f32 %v689_v40, %v2350_v6 }
 0x146   :  { %v674_v7 = vadd.f32 %v670_v18, %v646_v53  ;;  %v2444_v37 = vpop.permute.xlu1 %791  ;;  %v726_v43 = vmul.f32 %v713_v34, %v2360_v13  ;;  %v745_v25 = vrot.slane %v2386_v16, %v2374_v38  ;;  %v1749_v10 = vpop.eup %1748  ;;  %v560_v49 = vadd.f32 1.0, %v1747_v26 }
 0x147   :  { %v675_v27 = vadd.f32 %v671_v32, %v647_v44  ;;  %v727_v56 = vmul.f32 %v717_v39, %v2360_v13  ;;  %v309_v47 = vmul.f32 %v2127_v20, %v278_v24  ;;  %v200_v53 = vpop.permute.xlu0 %199  ;;  %v2453_v18 = vmul.f32 %v769_v48, %v2371_v22 }
 0x148   :  { %v702_v29 = vadd.f32 %v698_v60, %v674_v7  ;;  %v2456_v32 = vmul.f32 %v773_v30, %v2371_v22  ;;  %v754_v40 = vmul.f32 %v741_v58, %v2408_v9  ;;  %v310_v34 = vmul.f32 %v2131_v21, %v278_v24 }
 0x149   :  { %v1751_v11 = vpop.eup %1750  ;;  %v561_v7 = vadd.f32 1.0, %v1749_v10  ;;  %v703_v60 = vadd.f32 %v699_v14, %v675_v27  ;;  %v2464_v39 = vadd.f32 %v308_v54, %v2089_v41  ;;  %v755_v20 = vmul.f32 %v745_v25, %v2408_v9 }
 0x14a   :  { %v2461_v44 = vmul.f32 %v1751_v11, %v2316_v12  ;;  %v311_v48 = vmul.f32 %v2135_v46, %v278_v24  ;;  %v2469_v26 = vadd.f32 %v309_v47, %v2092_v42  ;;  %v2472_v30 = vadd.f32 %v310_v34, %v2095_v45 }
 0x14b   :  { %v2474_v58 = vpop.permute.xlu1 %469  ;;  %1754 = vrcp.f32 %v560_v49  ;;  %v730_v10 = vadd.f32 %v726_v43, %v702_v29  ;;  %v731_v49 = vadd.f32 %v727_v56, %v703_v60  ;;  %v2492_v27 = vpop.permute.xlu0 %819 }
 0x14c   :  { %3026 = vst [vmem:[#allocation17_spill] sm:$0xff] %v2472_v30  ;;  %v1753_v21 = vpop.eup %1752  ;;  %v632_v12 = vrot.slane %v2461_v44, %v2029_v61  ;;  %v665_v41 = vrot.slane %v2461_v44, %v2114_v59  ;;  %v693_v42 = vrot.slane %v2461_v44, %v2212_v33  ;;  %v721_v45 = vrot.slane %v2461_v44, %v2048_v15 }
 0x14d   :  { %v2481_v25 = vmul.f32 %v1753_v21, %v2318_v5  ;;  %v777_v46 = vrot.slane %v2461_v44, %v2369_v63  ;;  %1756 = vrcp.f32 %v561_v7  ;;  %v749_v54 = vrot.slane %v2461_v44, %v2374_v38 }
 0x14e   :  { %v639_v24 = vmul.f32 %v632_v12, %v2332_v1  ;;  %v672_v56 = vmul.f32 %v665_v41, %v2348_v28  ;;  %v758_v34 = vadd.f32 %v754_v40, %v730_v10  ;;  %v700_v21 = vmul.f32 %v693_v42, %v2350_v6 }
 0x14f   :  { %v636_v5 = vrot.slane %v2481_v25, %v2029_v61  ;;  %v669_v14 = vrot.slane %v2481_v25, %v2114_v59  ;;  %v697_v43 = vrot.slane %v2481_v25, %v2212_v33  ;;  %v725_v29 = vrot.slane %v2481_v25, %v2048_v15 }
 0x150   :  { %v648_v47 = vadd.f32 %v2306_v57, %v639_v24  ;;  %v781_v11 = vrot.slane %v2481_v25, %v2369_v63  ;;  %v2506_v7 = vpop.permute.xlu1 %847  ;;  %v728_v12 = vmul.f32 %v721_v45, %v2360_v13  ;;  %v784_v59 = vmul.f32 %v777_v46, %v2371_v22 }
 0x151   :  { %v640_v60 = vmul.f32 %v636_v5, %v2332_v1  ;;  %v673_v15 = vmul.f32 %v669_v14, %v2348_v28  ;;  %v701_v24 = vmul.f32 %v697_v43, %v2350_v6  ;;  %v753_v41 = vrot.slane %v2481_v25, %v2374_v38  ;;  %v2528_v6 = vpop.permute.xlu0 %903 }
 0x152   :  { %v676_v30 = vadd.f32 %v672_v56, %v648_v47  ;;  %v729_v10 = vmul.f32 %v725_v29, %v2360_v13  ;;  %v2519_v1 = vadd.f32 %v311_v48, %v2099_v50  ;;  %v2522_v42 = vadd.f32 %v2363_v17, %v200_v53 }
 0x153   :  { %v649_v40 = vadd.f32 %v2306_v57, %v640_v60  ;;  %v785_v46 = vmul.f32 %v781_v11, %v2371_v22  ;;  %v759_v28 = vadd.f32 %v755_v20, %v731_v49  ;;  %v2526_v5 = vadd.f32 %v2366_v8, %v200_v53 }
 0x154   :  { %v704_v45 = vadd.f32 %v700_v21, %v676_v30  ;;  %v756_v57 = vmul.f32 %v749_v54, %v2408_v9  ;;  %v1573_v13 = vmul.f32 -1.442695, %v2522_v42  ;;  %v805_v50 = vrot.slane %v2461_v44, %v2380_v3 }
 0x155   :  { %v677_v14 = vadd.f32 %v673_v15, %v649_v40  ;;  %v2534_v48 = vpop.permute.xlu1 %204  ;;  %v1755_v17 = vpop.eup %1754  ;;  %v757_v22 = vmul.f32 %v753_v41, %v2408_v9  ;;  %v1574_v20 = vmul.f32 -1.442695, %v2526_v5  ;;  %v809_v8 = vrot.slane %v2481_v25, %v2380_v3 }
 0x156   :  { %v732_v30 = vadd.f32 %v728_v12, %v704_v45  ;;  %1758 = vpow2.f32 %v1573_v13  ;;  %v786_v15 = vadd.f32 %v2453_v18, %v758_v34  ;;  %v797_v49 = vrot.slane %v2377_v4, %v2380_v3  ;;  %v2556_v12 = vpop.permute.xlu0 %987 }
 0x157   :  { %v705_v53 = vadd.f32 %v701_v24, %v677_v14  ;;  %v1757_v54 = vpop.eup %1756  ;;  %1760 = vpow2.f32 %v1574_v20  ;;  %v787_v29 = vadd.f32 %v2456_v32, %v759_v28  ;;  %v801_v9 = vrot.slane %v2386_v16, %v2380_v3 }
 0x158   :  { %v760_v43 = vadd.f32 %v756_v57, %v732_v30  ;;  %v2547_v47 = vmul.f32 %v1755_v17, %v2353_v35  ;;  %v810_v11 = vmul.f32 %v797_v49, %v2444_v37  ;;  %v812_v60 = vmul.f32 %v805_v50, %v2444_v37 }
 0x159   :  { %v733_v56 = vadd.f32 %v729_v10, %v705_v53  ;;  %v811_v34 = vmul.f32 %v801_v9, %v2444_v37  ;;  %v833_v21 = vrot.slane %v2461_v44, %v2383_v31  ;;  %v837_v32 = vrot.slane %v2481_v25, %v2383_v31 }
 0x15a   :  { %v788_v18 = vadd.f32 %v784_v59, %v760_v43  ;;  %v2558_v24 = vpop.permute.xlu1 %875  ;;  %v2561_v35 = vmul.f32 %v1757_v54, %v2356_v36  ;;  %v813_v40 = vmul.f32 %v809_v8, %v2444_v37  ;;  %v825_v59 = vrot.slane %v2377_v4, %v2383_v31 }
 0x15b   :  { %v761_v41 = vadd.f32 %v757_v22, %v733_v56  ;;  %v814_v10 = vadd.f32 %v810_v11, %v786_v15  ;;  %v815_v45 = vadd.f32 %v811_v34, %v787_v29  ;;  %v829_v44 = vrot.slane %v2386_v16, %v2383_v31  ;;  %v210_v22 = vpop.permute.xlu0 %209 }
 0x15c   :  { %v816_v28 = vadd.f32 %v812_v60, %v788_v18  ;;  %v838_v14 = vmul.f32 %v825_v59, %v2492_v27  ;;  %v388_v57 = vadd.f32 %v2389_v55, %v2464_v39  ;;  %v389_v36 = vadd.f32 %v2392_v23, %v2469_v26 }
 0x15d   :  { %v789_v25 = vadd.f32 %v785_v46, %v761_v41  ;;  %v839_v37 = vmul.f32 %v829_v44, %v2492_v27  ;;  %v840_v13 = vmul.f32 %v833_v21, %v2492_v27  ;;  %v841_v4 = vmul.f32 %v837_v32, %v2492_v27  ;;  %v3030_v44 = vld [vmem:[#allocation15_spill] sm:$0xff] }
 0x15e   :  { %v909_v50 = vrot.slane %v2420_v0, %v2212_v33  ;;  %v452_v16 = vadd.f32 %v2102_v51, %v388_v57  ;;  %v453_v46 = vadd.f32 %v2105_v52, %v389_v36  ;;  %v913_v55 = vrot.slane %v2440_v2, %v2212_v33 }
 0x15f   :  { %v817_v17 = vadd.f32 %v813_v40, %v789_v25  ;;  %v842_v39 = vadd.f32 %v838_v14, %v814_v10  ;;  %v843_v30 = vadd.f32 %v839_v37, %v815_v45  ;;  %v2582_v23 = vadd.f32 %v840_v13, %v816_v28  ;;  %v2586_v27 = vpop.permute.xlu1 %931  ;;  %v3028_v10 = vld [vmem:[#allocation17_spill] sm:$0xff]  ;;  %v3029_v45 = vld [vmem:[#allocation14_spill] sm:$0xff]  ;;  %v2625_v57 = vpop.permute.xlu0 %1071 }
 0x160   :  { %v853_v26 = vrot.slane %v2420_v0, %v2029_v61  ;;  %v1759_v20 = vpop.eup %1758  ;;  %v484_v8 = vadd.f32 %v2474_v58, %v452_v16  ;;  %v485_v51 = vadd.f32 %v2474_v58, %v453_v46  ;;  %v922_v52 = vmul.f32 %v909_v50, %v2528_v6  ;;  %v3031_v14 = vld [vmem:[#allocation13_spill] sm:$0xff] }
 0x161   :  { %v923_v53 = vmul.f32 %v913_v55, %v2528_v6  ;;  %v1761_v15 = vpop.eup %1760  ;;  %v558_v49 = vadd.f32 1.0, %v1759_v20  ;;  %v2592_v54 = vadd.f32 %v841_v4, %v817_v17  ;;  %v857_v43 = vrot.slane %v2440_v2, %v2029_v61  ;;  %v3032_v4 = vld [vmem:[#allocation11_spill] sm:$0xff]  ;;  %v3033_v17 = vld [vmem:[#allocation12_spill] sm:$0xff] }
 0x162   :  { %v993_v29 = vrot.slane %v2420_v0, %v2369_v63  ;;  %v559_v9 = vadd.f32 1.0, %v1761_v15  ;;  %v2599_v56 = vadd.f32 %v484_v8, %v2296_v62  ;;  %v2602_v11 = vadd.f32 %v485_v51, %v2296_v62  ;;  %v3027_v62 = vld [vmem:[#allocation16_spill] sm:$0xff] }
 0x163   :  { %v866_v60 = vmul.f32 %v853_v26, %v2506_v7  ;;  %1762 = vrcp.f32 %v558_v49  ;;  %v867_v18 = vmul.f32 %v857_v43, %v2506_v7  ;;  %v997_v34 = vrot.slane %v2440_v2, %v2369_v63  ;;  %v3034_v49 = vld [vmem:[#allocation10_spill] sm:$0xff] }
 0x164   :  { %v2610_v21 = vadd.f32 %v2411_v19, %v2534_v48  ;;  %1764 = vrcp.f32 %v559_v9  ;;  %v1579_v32 = vmul.f32 -1.442695, %v2599_v56  ;;  %v1580_v41 = vmul.f32 -1.442695, %v2602_v11  ;;  %v2627_v36 = vpop.permute.xlu1 %959 }
 0x165   :  { %v2616_v40 = vadd.f32 %v3027_v62, %v2534_v48  ;;  %v390_v28 = vadd.f32 %v3029_v45, %v3028_v10  ;;  %v391_v25 = vadd.f32 %v3030_v44, %v2519_v1  ;;  %v881_v19 = vrot.slane %v2420_v0, %v3031_v14 }
 0x166   :  { %v1577_v59 = vmul.f32 -1.442695, %v2610_v21  ;;  %1766 = vpow2.f32 %v1579_v32  ;;  %v870_v37 = vadd.f32 %v866_v60, %v842_v39  ;;  %v885_v13 = vrot.slane %v2440_v2, %v3031_v14 }
 0x167   :  { %v1578_v48 = vmul.f32 -1.442695, %v2616_v40  ;;  %1768 = vpow2.f32 %v1580_v41  ;;  %v454_v50 = vadd.f32 %v3032_v4, %v390_v28  ;;  %v455_v16 = vadd.f32 %v3033_v17, %v391_v25 }
 0x168   :  { %v894_v1 = vmul.f32 %v881_v19, %v2558_v24  ;;  %v871_v46 = vadd.f32 %v867_v18, %v843_v30  ;;  %v2636_v55 = vmul.f32 %v993_v29, %v2556_v12  ;;  %1770 = vpow2.f32 %v1577_v59 }
 0x169   :  { %v895_v26 = vmul.f32 %v885_v13, %v2558_v24  ;;  %1772 = vpow2.f32 %v1578_v48  ;;  %v486_v39 = vadd.f32 %v2474_v58, %v454_v50  ;;  %v487_v20 = vadd.f32 %v2474_v58, %v455_v16  ;;  %v2653_v58 = vpop.permute.xlu0 %1155  ;;  %v2655_v32 = vpop.permute.xlu1 %1015 }
 0x16a   :  { %v898_v8 = vadd.f32 %v894_v1, %v870_v37  ;;  %v1077_v15 = vrot.slane %v2547_v47, %v2029_v61  ;;  %v937_v43 = vrot.slane %v2420_v0, %v3034_v49  ;;  %v941_v30 = vrot.slane %v2440_v2, %v3034_v49 }
 0x16b   :  { %v899_v51 = vadd.f32 %v895_v26, %v871_v46  ;;  %v2647_v29 = vadd.f32 %v486_v39, %v210_v22  ;;  %v2649_v9 = vadd.f32 %v487_v20, %v210_v22  ;;  %v1081_v60 = vrot.slane %v2561_v35, %v2029_v61 }
 0x16c   :  { %v926_v18 = vadd.f32 %v922_v52, %v898_v8  ;;  %v950_v62 = vmul.f32 %v937_v43, %v2586_v27  ;;  %v951_v59 = vmul.f32 %v941_v30, %v2586_v27  ;;  %v1161_v10 = vrot.slane %v2547_v47, %v3034_v49 }
 0x16d   :  { %v927_v41 = vadd.f32 %v923_v53, %v899_v51  ;;  %v1763_v45 = vpop.eup %1762  ;;  %v2662_v22 = vmul.f32 %v997_v34, %v2556_v12  ;;  %v1581_v28 = vmul.f32 -1.442695, %v2647_v29  ;;  %v1582_v52 = vmul.f32 -1.442695, %v2649_v9 }
 0x16e   :  { %v2667_v44 = vmul.f32 %v1077_v15, %v2625_v57  ;;  %v1765_v25 = vpop.eup %1764  ;;  %v2670_v53 = vmul.f32 %v1763_v45, %v2522_v42  ;;  %v2673_v19 = vmul.f32 %v1081_v60, %v2625_v57  ;;  %v1165_v37 = vrot.slane %v2561_v35, %v3034_v49  ;;  %v2695_v20 = vpop.permute.xlu1 %1043 }
 0x16f   :  { %v2678_v34 = vmul.f32 %v1161_v10, %v2653_v58  ;;  %v2681_v48 = vmul.f32 %v1765_v25, %v2526_v5  ;;  %1774 = vpow2.f32 %v1581_v28  ;;  %v954_v13 = vadd.f32 %v950_v62, %v926_v18 }
 0x170   :  { %v965_v4 = vrot.slane %v2420_v0, %v2374_v38  ;;  %v1767_v50 = vpop.eup %1766  ;;  %v861_v42 = vrot.slane %v2670_v53, %v2029_v61  ;;  %1776 = vpow2.f32 %v1582_v52  ;;  %v955_v17 = vadd.f32 %v951_v59, %v927_v41 }
 0x171   :  { %v2688_v16 = vmul.f32 %v1165_v37, %v2653_v58  ;;  %v1769_v1 = vpop.eup %1768  ;;  %v564_v46 = vadd.f32 1.0, %v1767_v50  ;;  %v865_v5 = vrot.slane %v2681_v48, %v2029_v61  ;;  %v969_v26 = vrot.slane %v2440_v2, %v2374_v38 }
 0x172   :  { %v978_v39 = vmul.f32 %v965_v4, %v2627_v36  ;;  %v1771_v8 = vpop.eup %1770  ;;  %v565_v51 = vadd.f32 1.0, %v1769_v1  ;;  %v917_v15 = vrot.slane %v2670_v53, %v2212_v33  ;;  %v868_v43 = vmul.f32 %v861_v42, %v2506_v7 }
 0x173   :  { %3035 = vst [vmem:[#allocation16_spill] sm:$0xff] %v2688_v16  ;;  %v1001_v30 = vrot.slane %v2670_v53, %v2369_v63  ;;  %v1773_v60 = vpop.eup %1772  ;;  %1778 = vrcp.f32 %v564_v46  ;;  %v921_v18 = vrot.slane %v2681_v48, %v2212_v33  ;;  %v869_v41 = vmul.f32 %v865_v5, %v2506_v7  ;;  %v2724_v1 = vpop.permute.xlu1 %1099 }
 0x174   :  { %v1005_v62 = vrot.slane %v2681_v48, %v2369_v63  ;;  %1780 = vrcp.f32 %v565_v51  ;;  %v872_v59 = vadd.f32 %v868_v43, %v2582_v23  ;;  %v562_v10 = vadd.f32 1.0, %v1771_v8 }
 0x175   :  { %v563_v45 = vadd.f32 1.0, %v1773_v60  ;;  %v873_v28 = vadd.f32 %v869_v41, %v2592_v54  ;;  %v889_v52 = vrot.slane %v2670_v53, %v3031_v14  ;;  %v893_v25 = vrot.slane %v2681_v48, %v3031_v14 }
 0x176   :  { %v945_v37 = vrot.slane %v2670_v53, %v3034_v49  ;;  %1782 = vrcp.f32 %v562_v10  ;;  %v949_v7 = vrot.slane %v2681_v48, %v3034_v49  ;;  %v973_v23 = vrot.slane %v2670_v53, %v2374_v38 }
 0x177   :  { %v977_v4 = vrot.slane %v2681_v48, %v2374_v38  ;;  %v924_v54 = vmul.f32 %v917_v15, %v2528_v6  ;;  %1784 = vrcp.f32 %v563_v45  ;;  %v896_v50 = vmul.f32 %v889_v52, %v2558_v24 }
 0x178   :  { %v897_v42 = vmul.f32 %v893_v25, %v2558_v24  ;;  %v925_v46 = vmul.f32 %v921_v18, %v2528_v6  ;;  %v1008_v5 = vmul.f32 %v1001_v30, %v2556_v12  ;;  %v1009_v8 = vmul.f32 %v1005_v62, %v2556_v12  ;;  %v2734_v62 = vpop.permute.xlu0 %1239 }
 0x179   :  { %v979_v51 = vmul.f32 %v969_v26, %v2627_v36  ;;  %v1775_v43 = vpop.eup %1774  ;;  %v900_v60 = vadd.f32 %v896_v50, %v872_v59  ;;  %v952_v15 = vmul.f32 %v945_v37, %v2586_v27  ;;  %v953_v10 = vmul.f32 %v949_v7, %v2586_v27 }
 0x17a   :  { %v901_v41 = vadd.f32 %v897_v42, %v873_v28  ;;  %v1777_v45 = vpop.eup %1776  ;;  %v566_v52 = vadd.f32 1.0, %v1775_v43  ;;  %v980_v24 = vmul.f32 %v973_v23, %v2627_v36  ;;  %v981_v25 = vmul.f32 %v977_v4, %v2627_v36 }
 0x17b   :  { %v982_v6 = vadd.f32 %v978_v39, %v954_v13  ;;  %v567_v18 = vadd.f32 1.0, %v1777_v45  ;;  %v928_v30 = vadd.f32 %v924_v54, %v900_v60  ;;  %v983_v12 = vadd.f32 %v979_v51, %v955_v17  ;;  %v2744_v17 = vpop.permute.xlu1 %1127 }
 0x17c   :  { %v929_v16 = vadd.f32 %v925_v46, %v901_v41  ;;  %1786 = vrcp.f32 %v566_v52  ;;  %v1245_v26 = vrot.slane %v2547_v47, %v2380_v3  ;;  %v1249_v27 = vrot.slane %v2561_v35, %v2380_v3 }
 0x17d   :  { %v1021_v59 = vrot.slane %v2420_v0, %v2380_v3  ;;  %v1779_v28 = vpop.eup %1778  ;;  %1788 = vrcp.f32 %v567_v18  ;;  %v956_v36 = vadd.f32 %v952_v15, %v928_v30  ;;  %v1025_v39 = vrot.slane %v2440_v2, %v2380_v3 }
 0x17e   :  { %v957_v13 = vadd.f32 %v953_v10, %v929_v16  ;;  %v1781_v37 = vpop.eup %1780  ;;  %v2747_v7 = vmul.f32 %v1779_v28, %v2599_v56  ;;  %v2750_v23 = vmul.f32 %v1245_v26, %v2734_v62  ;;  %v1010_v4 = vadd.f32 %v2636_v55, %v982_v6 }
 0x17f   :  { %v1034_v54 = vmul.f32 %v1021_v59, %v2655_v32  ;;  %v984_v50 = vadd.f32 %v980_v24, %v956_v36  ;;  %v1011_v16 = vadd.f32 %v2662_v22, %v983_v12  ;;  %v1035_v46 = vmul.f32 %v1025_v39, %v2655_v32 }
 0x180   :  { %v985_v42 = vadd.f32 %v981_v25, %v957_v13  ;;  %v1783_v51 = vpop.eup %1782  ;;  %v2757_v43 = vmul.f32 %v1781_v37, %v2602_v11  ;;  %v1029_v56 = vrot.slane %v2670_v53, %v2380_v3  ;;  %v1033_v60 = vrot.slane %v2681_v48, %v2380_v3  ;;  %v1324_v11 = vpop.permute.xlu0 %1323 }
 0x181   :  { %v1329_v55 = vrot.slane %v2747_v7, %v3031_v14  ;;  %v1785_v41 = vpop.eup %1784  ;;  %v2766_v15 = vmul.f32 %v1783_v51, %v2610_v21  ;;  %v2769_v22 = vmul.f32 %v1249_v27, %v2734_v62  ;;  %v1012_v10 = vadd.f32 %v1008_v5, %v984_v50 }
 0x182   :  { %v1013_v45 = vadd.f32 %v1009_v8, %v985_v42  ;;  %v2772_v52 = vmul.f32 %v1785_v41, %v2616_v40  ;;  %v1036_v24 = vmul.f32 %v1029_v56, %v2655_v32  ;;  %v1037_v25 = vmul.f32 %v1033_v60, %v2655_v32  ;;  %v2782_v8 = vpop.permute.xlu1 %1183 }
 0x183   :  { %v1038_v6 = vadd.f32 %v1034_v54, %v1010_v4  ;;  %v1085_v18 = vrot.slane %v2766_v15, %v2029_v61  ;;  %v1169_v21 = vrot.slane %v2766_v15, %v3034_v49  ;;  %v1253_v30 = vrot.slane %v2766_v15, %v2380_v3 }
 0x184   :  { %v1039_v5 = vadd.f32 %v1035_v46, %v1011_v16  ;;  %v1089_v40 = vrot.slane %v2772_v52, %v2029_v61  ;;  %v1333_v12 = vrot.slane %v2757_v43, %v3031_v14  ;;  %v2788_v32 = vmul.f32 %v1329_v55, %v1324_v11 }
 0x185   :  { %v1049_v26 = vrot.slane %v2420_v0, %v2383_v31  ;;  %v1173_v27 = vrot.slane %v2772_v52, %v3034_v49  ;;  %v1257_v59 = vrot.slane %v2772_v52, %v2380_v3  ;;  %v1040_v28 = vadd.f32 %v1036_v24, %v1012_v10 }
 0x186   :  { %v1041_v36 = vadd.f32 %v1037_v25, %v1013_v45  ;;  %v1787_v13 = vpop.eup %1786  ;;  %v1092_v39 = vmul.f32 %v1085_v18, %v2625_v57  ;;  %v2798_v37 = vmul.f32 %v1169_v21, %v2653_v58  ;;  %v2801_v4 = vmul.f32 %v1253_v30, %v2734_v62  ;;  %v2824_v10 = vpop.permute.xlu1 %1211 }
 0x187   :  { %v1053_v0 = vrot.slane %v2440_v2, %v2383_v31  ;;  %v1789_v54 = vpop.eup %1788  ;;  %v2806_v50 = vmul.f32 %v1787_v13, %v2647_v29  ;;  %v1057_v42 = vrot.slane %v2670_v53, %v2383_v31  ;;  %v1061_v16 = vrot.slane %v2681_v48, %v2383_v31  ;;  %v1408_v48 = vpop.permute.xlu0 %1407 }
 0x188   :  { %v1062_v46 = vmul.f32 %v1049_v26, %v2695_v20  ;;  %v2814_v51 = vmul.f32 %v1789_v54, %v2649_v9  ;;  %v1093_v56 = vmul.f32 %v1089_v40, %v2625_v57  ;;  %v2817_v60 = vmul.f32 %v1333_v12, %v1324_v11 }
 0x189   :  { %v1063_v2 = vmul.f32 %v1053_v0, %v2695_v20  ;;  %v1337_v29 = vrot.slane %v2806_v50, %v3031_v14  ;;  %v1064_v55 = vmul.f32 %v1057_v42, %v2695_v20  ;;  %v1065_v53 = vmul.f32 %v1061_v16, %v2695_v20 }
 0x18a   :  { %v1066_v41 = vadd.f32 %v1062_v46, %v1038_v6  ;;  %v2827_v9 = vmul.f32 %v1173_v27, %v2653_v58  ;;  %v1341_v57 = vrot.slane %v2814_v51, %v3031_v14  ;;  %v1413_v24 = vrot.slane %v2747_v7, %v2374_v38 }
 0x18b   :  { %v1067_v45 = vadd.f32 %v1063_v2, %v1039_v5  ;;  %v1068_v25 = vadd.f32 %v1064_v55, %v1040_v28  ;;  %v1069_v18 = vadd.f32 %v1065_v53, %v1041_v36  ;;  %v1421_v21 = vrot.slane %v2806_v50, %v2374_v38 }
 0x18c   :  { %v1425_v20 = vrot.slane %v2814_v51, %v2374_v38  ;;  %v2838_v6 = vmul.f32 %v1257_v59, %v2734_v62  ;;  %v2840_v58 = vmul.f32 %v1337_v29, %v1324_v11  ;;  %v1417_v30 = vrot.slane %v2757_v43, %v2374_v38 }
 0x18d   :  { %v2844_v5 = vmul.f32 %v1413_v24, %v1408_v48  ;;  %v1094_v40 = vadd.f32 %v2667_v44, %v1066_v41  ;;  %v1095_v12 = vadd.f32 %v2673_v19, %v1067_v45  ;;  %v1096_v26 = vadd.f32 %v1092_v39, %v1068_v25  ;;  %v1268_v39 = vpop.permute.xlu1 %1267 }
 0x18e   :  { %v1097_v27 = vadd.f32 %v1093_v56, %v1069_v18  ;;  %v1105_v28 = vrot.slane %v2547_v47, %v3031_v14  ;;  %v1109_v62 = vrot.slane %v2561_v35, %v3031_v14  ;;  %v1113_v59 = vrot.slane %v2766_v15, %v3031_v14 }
 0x18f   :  { %v1117_v36 = vrot.slane %v2772_v52, %v3031_v14  ;;  %v2856_v13 = vmul.f32 %v1341_v57, %v1324_v11  ;;  %v2858_v0 = vmul.f32 %v1417_v30, %v1408_v48  ;;  %v2860_v44 = vmul.f32 %v1421_v21, %v1408_v48 }
 0x190   :  { %v2862_v19 = vmul.f32 %v1425_v20, %v1408_v48  ;;  %v1118_v54 = vmul.f32 %v1105_v28, %v2724_v1  ;;  %v1119_v42 = vmul.f32 %v1109_v62, %v2724_v1  ;;  %v1120_v16 = vmul.f32 %v1113_v59, %v2724_v1 }
 0x191   :  { %v1121_v46 = vmul.f32 %v1117_v36, %v2724_v1  ;;  %v1497_v14 = vrot.slane %v2747_v7, %v2383_v31  ;;  %v1501_v11 = vrot.slane %v2757_v43, %v2383_v31  ;;  %v1505_v56 = vrot.slane %v2806_v50, %v2383_v31 }
 0x192   :  { %v1509_v2 = vrot.slane %v2814_v51, %v2383_v31  ;;  %v1122_v29 = vadd.f32 %v1118_v54, %v1094_v40  ;;  %v1123_v55 = vadd.f32 %v1119_v42, %v1095_v12  ;;  %v1124_v53 = vadd.f32 %v1120_v16, %v1096_v26  ;;  %v1296_v26 = vpop.permute.xlu1 %1295 }
 0x193   :  { %v1125_v41 = vadd.f32 %v1121_v46, %v1097_v27  ;;  %v1133_v48 = vrot.slane %v2547_v47, %v2212_v33  ;;  %v1137_v1 = vrot.slane %v2561_v35, %v2212_v33  ;;  %v1141_v57 = vrot.slane %v2766_v15, %v2212_v33 }
 0x194   :  { %v1145_v45 = vrot.slane %v2772_v52, %v2212_v33  ;;  %v1189_v24 = vrot.slane %v2547_v47, %v2374_v38  ;;  %v1193_v25 = vrot.slane %v2561_v35, %v2374_v38  ;;  %v1197_v18 = vrot.slane %v2766_v15, %v2374_v38 }
 0x195   :  { %v1201_v21 = vrot.slane %v2772_v52, %v2374_v38  ;;  %v1146_v20 = vmul.f32 %v1133_v48, %v2744_v17  ;;  %v1147_v30 = vmul.f32 %v1137_v1, %v2744_v17  ;;  %v1148_v40 = vmul.f32 %v1141_v57, %v2744_v17  ;;  %v3036_v57 = vld [vmem:[#allocation16_spill] sm:$0xff] }
 0x196   :  { %v1149_v12 = vmul.f32 %v1145_v45, %v2744_v17  ;;  %v1202_v27 = vmul.f32 %v1189_v24, %v2782_v8  ;;  %v1203_v28 = vmul.f32 %v1193_v25, %v2782_v8  ;;  %v1204_v62 = vmul.f32 %v1197_v18, %v2782_v8 }
 0x197   :  { %v1205_v59 = vmul.f32 %v1201_v21, %v2782_v8  ;;  %v1150_v36 = vadd.f32 %v1146_v20, %v1122_v29  ;;  %v1151_v54 = vadd.f32 %v1147_v30, %v1123_v55  ;;  %v1152_v38 = vadd.f32 %v1148_v40, %v1124_v53  ;;  %v1352_v30 = vpop.permute.xlu1 %1351 }
 0x198   :  { %v1153_v42 = vadd.f32 %v1149_v12, %v1125_v41  ;;  %v1217_v16 = vrot.slane %v2547_v47, %v2369_v63  ;;  %v1221_v46 = vrot.slane %v2561_v35, %v2369_v63  ;;  %v1225_v17 = vrot.slane %v2766_v15, %v2369_v63 }
 0x199   :  { %v1229_v48 = vrot.slane %v2772_v52, %v2369_v63  ;;  %v1178_v1 = vadd.f32 %v2678_v34, %v1150_v36  ;;  %v1179_v8 = vadd.f32 %v3036_v57, %v1151_v54  ;;  %v1180_v29 = vadd.f32 %v2798_v37, %v1152_v38 }
 0x19a   :  { %v1181_v55 = vadd.f32 %v2827_v9, %v1153_v42  ;;  %v1230_v53 = vmul.f32 %v1217_v16, %v2824_v10  ;;  %v1231_v41 = vmul.f32 %v1221_v46, %v2824_v10  ;;  %v1232_v45 = vmul.f32 %v1225_v17, %v2824_v10 }
 0x19b   :  { %v1233_v24 = vmul.f32 %v1229_v48, %v2824_v10  ;;  %v1206_v25 = vadd.f32 %v1202_v27, %v1178_v1  ;;  %v1207_v18 = vadd.f32 %v1203_v28, %v1179_v8  ;;  %v1208_v21 = vadd.f32 %v1204_v62, %v1180_v29  ;;  %v1380_v48 = vpop.permute.xlu1 %1379 }
 0x19c   :  { %v1209_v20 = vadd.f32 %v1205_v59, %v1181_v55  ;;  %v1273_v34 = vrot.slane %v2547_v47, %v2383_v31  ;;  %v1277_v37 = vrot.slane %v2561_v35, %v2383_v31  ;;  %v1281_v9 = vrot.slane %v2766_v15, %v2383_v31 }
 0x19d   :  { %v1285_v40 = vrot.slane %v2772_v52, %v2383_v31  ;;  %v1234_v12 = vadd.f32 %v1230_v53, %v1206_v25  ;;  %v1235_v36 = vadd.f32 %v1231_v41, %v1207_v18  ;;  %v1236_v10 = vadd.f32 %v1232_v45, %v1208_v21  ;;  %v3037_v31 = vld [vmem:[#allocation8_spill] sm:$0xff] }
 0x19e   :  { %v1237_v27 = vadd.f32 %v1233_v24, %v1209_v20  ;;  %v1286_v28 = vmul.f32 %v1273_v34, %v1268_v39  ;;  %v1287_v62 = vmul.f32 %v1277_v37, %v1268_v39  ;;  %v1288_v59 = vmul.f32 %v1281_v9, %v1268_v39 }
 0x19f   :  { %v1289_v54 = vmul.f32 %v1285_v40, %v1268_v39  ;;  %v1262_v38 = vadd.f32 %v2750_v23, %v1234_v12  ;;  %v1263_v47 = vadd.f32 %v2769_v22, %v1235_v36  ;;  %v1264_v35 = vadd.f32 %v2801_v4, %v1236_v10  ;;  %v1436_v36 = vpop.permute.xlu1 %1435 }
 0x1a0   :  { %v1265_v42 = vadd.f32 %v2838_v6, %v1237_v27  ;;  %v1301_v15 = vrot.slane %v2747_v7, %v2029_v61  ;;  %v1305_v52 = vrot.slane %v2757_v43, %v2029_v61  ;;  %v1309_v16 = vrot.slane %v2806_v50, %v2029_v61 }
 0x1a1   :  { %v1313_v39 = vrot.slane %v2814_v51, %v2029_v61  ;;  %v1290_v46 = vadd.f32 %v1286_v28, %v1262_v38  ;;  %v1291_v23 = vadd.f32 %v1287_v62, %v1263_v47  ;;  %v1292_v17 = vadd.f32 %v1288_v59, %v1264_v35 }
 0x1a2   :  { %v1293_v22 = vadd.f32 %v1289_v54, %v1265_v42  ;;  %v1314_v4 = vmul.f32 %v1301_v15, %v1296_v26  ;;  %v1315_v1 = vmul.f32 %v1305_v52, %v1296_v26  ;;  %v1316_v6 = vmul.f32 %v1309_v16, %v1296_v26 }
 0x1a3   :  { %v1317_v57 = vmul.f32 %v1313_v39, %v1296_v26  ;;  %v1357_v8 = vrot.slane %v2747_v7, %v2212_v33  ;;  %v1361_v29 = vrot.slane %v2757_v43, %v2212_v33  ;;  %v1365_v55 = vrot.slane %v2806_v50, %v2212_v33 }
 0x1a4   :  { %v1369_v61 = vrot.slane %v2814_v51, %v2212_v33  ;;  %v1318_v53 = vadd.f32 %v1314_v4, %v1290_v46  ;;  %v1319_v41 = vadd.f32 %v1315_v1, %v1291_v23  ;;  %v1320_v45 = vadd.f32 %v1316_v6, %v1292_v17  ;;  %v1464_v23 = vpop.permute.xlu1 %1463  ;;  %v1492_v1 = vpop.permute.xlu0 %1491 }
 0x1a5   :  { %v1321_v24 = vadd.f32 %v1317_v57, %v1293_v22  ;;  %v1370_v25 = vmul.f32 %v1357_v8, %v1352_v30  ;;  %v1371_v18 = vmul.f32 %v1361_v29, %v1352_v30  ;;  %v1372_v21 = vmul.f32 %v1365_v55, %v1352_v30 }
 0x1a6   :  { %v1373_v26 = vmul.f32 %v1369_v61, %v1352_v30  ;;  %v1346_v20 = vadd.f32 %v2788_v32, %v1318_v53  ;;  %v1347_v34 = vadd.f32 %v2817_v60, %v1319_v41  ;;  %v1348_v37 = vadd.f32 %v2840_v58, %v1320_v45 }
 0x1a7   :  { %v1349_v9 = vadd.f32 %v2856_v13, %v1321_v24  ;;  %v1385_v40 = vrot.slane %v2747_v7, %v3034_v49  ;;  %v1389_v33 = vrot.slane %v2757_v43, %v3034_v49  ;;  %v1393_v12 = vrot.slane %v2806_v50, %v3034_v49 }
 0x1a8   :  { %v1397_v30 = vrot.slane %v2814_v51, %v3034_v49  ;;  %v1374_v32 = vadd.f32 %v1370_v25, %v1346_v20  ;;  %v1375_v10 = vadd.f32 %v1371_v18, %v1347_v34  ;;  %v1376_v60 = vadd.f32 %v1372_v21, %v1348_v37 }
 0x1a9   :  { %v1377_v27 = vadd.f32 %v1373_v26, %v1349_v9  ;;  %v1398_v58 = vmul.f32 %v1385_v40, %v1380_v48  ;;  %v1399_v28 = vmul.f32 %v1389_v33, %v1380_v48  ;;  %v1400_v13 = vmul.f32 %v1393_v12, %v1380_v48 }
 0x1aa   :  { %v1401_v62 = vmul.f32 %v1397_v30, %v1380_v48  ;;  %v1441_v59 = vrot.slane %v2747_v7, %v2369_v63  ;;  %v1445_v54 = vrot.slane %v2757_v43, %v2369_v63  ;;  %v1449_v38 = vrot.slane %v2806_v50, %v2369_v63 }
 0x1ab   :  { %v1453_v49 = vrot.slane %v2814_v51, %v2369_v63  ;;  %v1402_v47 = vadd.f32 %v1398_v58, %v1374_v32  ;;  %v1403_v35 = vadd.f32 %v1399_v28, %v1375_v10  ;;  %v1404_v42 = vadd.f32 %v1400_v13, %v1376_v60 }
 0x1ac   :  { %v1405_v15 = vadd.f32 %v1401_v62, %v1377_v27  ;;  %v1454_v52 = vmul.f32 %v1441_v59, %v1436_v36  ;;  %v1455_v16 = vmul.f32 %v1445_v54, %v1436_v36  ;;  %v1456_v39 = vmul.f32 %v1449_v38, %v1436_v36 }
 0x1ad   :  { %v1457_v46 = vmul.f32 %v1453_v49, %v1436_v36  ;;  %v1430_v17 = vadd.f32 %v2844_v5, %v1402_v47  ;;  %v1431_v22 = vadd.f32 %v2858_v0, %v1403_v35  ;;  %v1432_v48 = vadd.f32 %v2860_v44, %v1404_v42 }
 0x1ae   :  { %v1433_v4 = vadd.f32 %v2862_v19, %v1405_v15  ;;  %v1469_v63 = vrot.slane %v2747_v7, %v2380_v3  ;;  %v1473_v6 = vrot.slane %v2757_v43, %v2380_v3  ;;  %v1477_v57 = vrot.slane %v2806_v50, %v2380_v3 }
 0x1af   :  { %v1481_v8 = vrot.slane %v2814_v51, %v2380_v3  ;;  %v1458_v5 = vadd.f32 %v1454_v52, %v1430_v17  ;;  %v1459_v29 = vadd.f32 %v1455_v16, %v1431_v22  ;;  %v1460_v0 = vadd.f32 %v1456_v39, %v1432_v48 }
 0x1b0   :  { %v1461_v55 = vadd.f32 %v1457_v46, %v1433_v4  ;;  %v1482_v44 = vmul.f32 %v1469_v63, %v1464_v23  ;;  %v1483_v19 = vmul.f32 %v1473_v6, %v1464_v23  ;;  %v1484_v61 = vmul.f32 %v1477_v57, %v1464_v23 }
 0x1b1   :  { %v1485_v53 = vmul.f32 %v1481_v8, %v1464_v23  ;;  %v1510_v41 = vmul.f32 %v1497_v14, %v1492_v1  ;;  %v1511_v45 = vmul.f32 %v1501_v11, %v1492_v1  ;;  %v1512_v3 = vmul.f32 %v1505_v56, %v1492_v1 }
 0x1b2   :  { %v1513_v24 = vmul.f32 %v1509_v2, %v1492_v1  ;;  %v1486_v25 = vadd.f32 %v1482_v44, %v1458_v5  ;;  %v1487_v18 = vadd.f32 %v1483_v19, %v1459_v29  ;;  %v1488_v21 = vadd.f32 %v1484_v61, %v1460_v0  ;;  %v3038_v2 = vld [vmem:[#allocation9_spill] sm:$0xff] }
 0x1b3   :  { %v1489_v26 = vadd.f32 %v1485_v53, %v1461_v55  ;;  %v1520_v37 = vstv %s1974_s22  ;;  %v1531_v9 = vstv %s1982_s29 }
 0x1b4   :  { %v1514_v20 = vadd.f32 %v1510_v41, %v1486_v25  ;;  %v1515_v34 = vadd.f32 %v1511_v45, %v1487_v18  ;;  %v1516_v7 = vadd.f32 %v1512_v3, %v1488_v21 }
 0x1b5   :  { %v1517_v14 = vadd.f32 %v1513_v24, %v1489_v26 }
 0x1b6   :  { %v1521_v43 = vmul.f32 %v1520_v37, %v1514_v20  ;;  %v1522_v11 = vmul.f32 %v1520_v37, %v1515_v34  ;;  %v1532_v40 = vmul.f32 %v1531_v9, %v1516_v7 }
 0x1b7   :  { %v1533_v33 = vmul.f32 %v1531_v9, %v1517_v14 }
 0x1b8   :  { %v1525_v50 = vcombine.low %v1521_v43, %v1522_v11 }
 0x1b9   :  { %v1536_v56 = vcombine.low %v1532_v40, %v1533_v33 }
 0x1ba   :  { %v1527_v51 = vadd.f32 %v1525_v50, %v3037_v31 }
 0x1bb   :  { %v1538_v12 = vadd.f32 %v1536_v56, %v3038_v2 }
 0x1bc   :  { %1528 = vst [vmem:[#allocation4] sm:$0xff] %v1527_v51 }
 0x1bd   :  { %1540 = vst [vmem:[#allocation4 + $0x8] sm:$0xff] %v1538_v12 }
 0x1be   :  { %1813 = shalt.err (!%p1810_p9)
}
 0x1bf   :  { %s1814_s17 = scalar_lea.hbm %s3009_s5, 256 }
 0x1c0   :  { %p1815_p10 = scmp.ne.s32.totalorder %s3009_s5, %s1814_s17  ;;  %p1818_p11 = scmp.lt.u32.totalorder %s1814_s17, %s3009_s5 }
 0x1c2   :  { %p1820_p12 = pnand %p1818_p11, %p1815_p10 }
 0x1c4   :  { %1823 = shalt.err (!%p1820_p12)
}
 0x1c5   :  { %s1863_s21 = smov 128   ;;  %s1864_s22 = smov 8  }
 0x1c6   :  { %1552 = dma.vmem_to_hbm [thread:$0]  %s1547_s13, 256, %s3009_s5, [#allocation5], %s1863_s21, %s1863_s21, %s1864_s22  }
 0x1c7   :  { %1826 = dma.done.wait [#allocation5], 256  }
 0x1c8   :  { %1827 = vsyncadd [#allocation5], 4294967040 }
 0x1c9   :  { %1556 = vsyncpa [#allocation5], 1 }

</bundles_post_ra>
